<compile_context>
chip_gen: v7x
topology: tpu7x:2x2x1
jax: 0.10.0
libtpu: 0.0.40
codegen_flags: <defaults>
</compile_context>

<pallas_src>
import functools

import jax
import jax.numpy as jnp
from jax.experimental import pallas as pl
from jax.experimental.pallas import tpu as pltpu


_LEFT = 1  # left zero-pad column count of the in-VMEM padded activations


def _round_up(v, m):
    return (v + m - 1) // m * m


def _conv4_kernel(*refs, geoms):
    """Fused Conv4 forward for one batch element (grid = (B,)).

    refs layout:
      [x0_ref, w_0..w_{n-1}, scale_ref, shift_ref, o_ref, zbuf, pad_1..pad_{n-1}]

    x0_ref : (H0*W0, K0)   bf16  host-side im2col patches of block 0
                                  (K0 = 9*Cin rounded up to 8, zero-padded cols).
    w_0    : (K0, Cout)    bf16  block-0 im2col weights.
    w_k    : (9*C, Cout)   bf16  blocks >=1: 3x3 taps, (ky,kx)-major / chan-minor.
    scale/shift : (nblk, Cout) f32  conv bias + eval-mode BatchNorm folded.
    o_ref  : (Hf*Wf, Cout) f32   final pooled feature map (row-major spatial).
    zbuf   : (>=max rows, Cout) f32  scratch for one block's pooled max slab.
    pad_k  : ((H_k+2)*Wp_k, Cout) f32  block k's zero-padded input, flattened
                                  row-major with row pitch Wp_k (multiple of 8).
    """
    nblk = len(geoms)
    x0_ref = refs[0]
    w_refs = refs[1:1 + nblk]
    sc_ref = refs[1 + nblk]
    sh_ref = refs[2 + nblk]
    o_ref = refs[3 + nblk]
    zbuf = refs[4 + nblk]
    pad_refs = refs[5 + nblk:]

    cout = o_ref.shape[-1]
    Hf, Wf = geoms[-1][0] // 2, geoms[-1][1] // 2

    # Zero the padded-input scratches (borders must be zero; interiors are fully
    # overwritten below).  Deliberately done EVERY grid step: gating on
    # pl.program_id(0) == 0 is unsafe when the "parallel" batch axis is split
    # across TensorCores (megacore / v7x) since only one core sees step 0.
    for r in pad_refs:
        r[...] = jnp.zeros(r.shape, r.dtype)

    def bn_relu(acc, blk):
        # folded conv-bias + eval-mode BatchNorm + ReLU, f32 epilogue.
        return jnp.maximum(acc * sc_ref[blk:blk + 1, :] + sh_ref[blk:blk + 1, :],
                           0.0)

    def emit_into(dst_ref, dst_pitch):
        # place pooled row `oy` at padded coords (oy+1, _LEFT..) of the next block
        def emit(oy, wo, pooled):
            dst_ref[pl.ds((oy + 1) * dst_pitch + _LEFT, wo), :] = pooled
        return emit

    def emit_out(oy, wo, pooled):
        o_ref[pl.ds(oy * Wf, wo), :] = pooled

    def pool_emit(blk, z, pitch, emit):
        """2x2 / stride-2 max pool of z (conv output with row pitch `pitch`,
        z[0] == spatial position (0, 0)): two XLU rolls + two full-slab maxes,
        then ONE strided VMEM read per pooled output row."""
        H, W = geoms[blk][0], geoms[blk][1]
        Ho, Wo = H // 2, W // 2
        nz = z.shape[0]
        m = jnp.maximum(z, pltpu.roll(z, nz - 1, axis=0))        # pair max along x
        m = jnp.maximum(m, pltpu.roll(m, nz - pitch, axis=0))    # pair max along y
        zbuf[0:nz, :] = m                         # m[r] = max of the 2x2 window @ r
        st = 2 if Wo > 1 else 1
        for oy in range(Ho):
            emit(oy, Wo, zbuf[pl.ds(2 * oy * pitch, Wo, stride=st), :])

    # ---- Block 0: host-side im2col -> a single MXU matmul --------------------
    acc = jnp.dot(x0_ref[...], w_refs[0][...],
                  preferred_element_type=jnp.float32)            # (H0*W0, Cout)
    z = bn_relu(acc, 0)
    emit = emit_into(pad_refs[0], geoms[1][2]) if nblk > 1 else emit_out
    pool_emit(0, z, geoms[0][2], emit)

    # ---- Blocks 1..n-1: 2 rolls + 9 aligned slices + accumulating matmuls ----
    for blk in range(1, nblk):
        H, W, Wp = geoms[blk]
        Pc = _round_up((H - 1) * Wp + W, 8)    # contiguous run over interior rows
        cin = w_refs[blk].shape[0] // 9
        a0 = pad_refs[blk - 1][...]                              # ((H+2)*Wp, C)
        n0 = a0.shape[0]
        # srcs[kx][i] == a0[i + kx]: the +-1 column shifts become whole-array
        # XLU rolls so every im2col slice below starts at a multiple of 8.
        srcs = (a0,
                pltpu.roll(a0, n0 - 1, axis=0),
                pltpu.roll(a0, n0 - 2, axis=0))
        acc = jnp.zeros((Pc, cout), jnp.float32)
        for kx in range(3):            # kx-major: one rolled copy live at a time
            src = srcs[kx]
            for ky in range(3):
                # start of the run for tap (ky, kx) inside the shifted copy:
                # base + (ky-1)*Wp + (kx-1) - kx  with base = Wp + _LEFT  (_LEFT=1)
                s = ky * Wp
                piece = src[s:s + Pc, :].astype(jnp.bfloat16)
                tap = (ky * 3 + kx) * cin
                acc = acc + jnp.dot(piece, w_refs[blk][tap:tap + cin, :],
                                    preferred_element_type=jnp.float32)
        z = bn_relu(acc, blk)
        emit = (emit_into(pad_refs[blk], geoms[blk + 1][2])
                if blk < nblk - 1 else emit_out)
        pool_emit(blk, z, Wp, emit)


@jax.jit
def trainable_feature_extractor_forward(x_nchw, params_list, eps=1e-5):
    """Pallas-backed forward: Conv4 backbone + Flatten, reshaped to (B, F, 1, 1)."""
    # TODO(synk): BatchNorm2d uses deterministic eval-mode running stats; the
    # PyTorch module in training mode would use per-batch statistics.
    x = jnp.transpose(x_nchw, (0, 2, 3, 1)).astype(jnp.float32)   # NCHW -> NHWC
    B, H, W, Cin = x.shape
    nblk = len(params_list)
    Cout = params_list[0]["w"].shape[-1]
    for p in params_list:
        assert p["w"].shape[-1] == Cout, "all Conv4 blocks share Cout"

    # Static per-block geometry: spatial halves after every block.  Block 0 has
    # no in-kernel padding (host-side im2col); later blocks use a zero-padded
    # activation whose row pitch is a multiple of 8 (sublane-aligned ky shifts).
    geoms = []
    h, w = H, W
    for i in range(nblk):
        assert h >= 2 and w >= 2 and h % 2 == 0 and w % 2 == 0, (h, w)
        geoms.append((h, w, w if i == 0 else _round_up(w + 2, 8)))
        h //= 2
        w //= 2
    Hf, Wf = h, w

    # ---- Block-0 im2col on the host: (B, H*W, K0) bf16 patch slab ------------
    k0 = _round_up(9 * Cin, 8)
    xpad = jnp.pad(x, ((0, 0), (1, 1), (1, 1), (0, 0)))
    patches = jnp.concatenate(
        [xpad[:, ky:ky + H, kx:kx + W, :] for ky in range(3) for kx in range(3)],
        axis=-1)                                                 # (B, H, W, 9*Cin)
    patches = jnp.pad(patches, ((0, 0), (0, 0), (0, 0), (0, k0 - 9 * Cin)))
    x0 = patches.reshape(B, H * W, k0).astype(jnp.bfloat16)

    # Weights -> im2col layout (9*Cin, Cout) bf16; conv bias + eval BatchNorm
    # folded into per-channel scale/shift (f32).
    ws, scales, shifts = [], [], []
    for i, p in enumerate(params_list):
        wk = p["w"].astype(jnp.float32)                          # (3,3,Cin_k,Cout)
        wk = wk.reshape(9 * wk.shape[2], Cout)
        if i == 0 and wk.shape[0] != k0:
            wk = jnp.pad(wk, ((0, k0 - wk.shape[0]), (0, 0)))
        ws.append(wk.astype(jnp.bfloat16))
        g = p["gamma"] / jnp.sqrt(p["var"] + eps)
        scales.append(g)
        shifts.append((p["b"] - p["mean"]) * g + p["beta"])
    scales = jnp.stack(scales).astype(jnp.float32)               # (nblk, Cout)
    shifts = jnp.stack(shifts).astype(jnp.float32)

    def n_rows(i):
        hh, ww, pitch = geoms[i]
        return hh * ww if i == 0 else _round_up((hh - 1) * pitch + ww, 8)

    zbuf_rows = _round_up(max(n_rows(i) for i in range(nblk)), 8)
    pad_rows = [(geoms[i][0] + 2) * geoms[i][2] for i in range(1, nblk)]

    out = pl.pallas_call(
        functools.partial(_conv4_kernel, geoms=tuple(geoms)),
        out_shape=jax.ShapeDtypeStruct((B, Hf * Wf, Cout), jnp.float32),
        grid=(B,),
        in_specs=(
            [pl.BlockSpec((None, H * W, k0), lambda b: (b, 0, 0))]
            + [pl.BlockSpec(wk.shape, lambda b: (0, 0)) for wk in ws]
            + [pl.BlockSpec(scales.shape, lambda b: (0, 0)),
               pl.BlockSpec(shifts.shape, lambda b: (0, 0))]),
        out_specs=pl.BlockSpec((None, Hf * Wf, Cout), lambda b: (b, 0, 0)),
        scratch_shapes=(
            [pltpu.VMEM((zbuf_rows, Cout), jnp.float32)]                  # zbuf
            + [pltpu.VMEM((r, Cout), jnp.float32) for r in pad_rows]),    # pads
        compiler_params=pltpu.CompilerParams(
            dimension_semantics=("parallel",)),     # v7x: 2 TCs split the batch
    )(x0, *ws, scales, shifts)

    # PyTorch Flatten flattens NCHW order; TrainableFeatureExtractor then
    # reshapes the features to (B, F, 1, 1).
    feat = jnp.transpose(out.reshape(B, Hf, Wf, Cout), (0, 3, 1, 2))
    feat = feat.reshape(B, Cout * Hf * Wf)
    return feat.reshape(B, feat.shape[1], 1, 1)


def init_block_params(key, cin, cout):
    k1, k2, k3, k4, k5, k6 = jax.random.split(key, 6)
    return dict(
        w=jax.random.normal(k1, (3, 3, cin, cout), jnp.float32)
          * (1.0 / (3 * 3 * cin) ** 0.5),
        b=0.01 * jax.random.normal(k2, (cout,), jnp.float32),
        gamma=1.0 + 0.1 * jax.random.normal(k3, (cout,), jnp.float32),
        beta=0.1 * jax.random.normal(k4, (cout,), jnp.float32),
        mean=0.05 * jax.random.normal(k5, (cout,), jnp.float32),
        var=1.0 + 0.1 * jax.random.uniform(k6, (cout,), jnp.float32),
    )


def reference_forward(x_nchw, params_list, eps=1e-5):
    """Pure-JAX f32 reference (no Pallas) with identical semantics."""
    x = jnp.transpose(x_nchw, (0, 2, 3, 1)).astype(jnp.float32)
    for p in params_list:
        y = jax.lax.conv_general_dilated(
            x, p["w"], (1, 1), "SAME",
            dimension_numbers=("NHWC", "HWIO", "NHWC"),
            precision=jax.lax.Precision.HIGHEST) + p["b"]
        y = (y - p["mean"]) / jnp.sqrt(p["var"] + eps) * p["gamma"] + p["beta"]
        y = jnp.maximum(y, 0.0)
        y = jax.lax.reduce_window(y, -jnp.inf, jax.lax.max,
                                  (1, 2, 2, 1), (1, 2, 2, 1), "VALID")
        x = y
    B, Ho, Wo, C = x.shape
    feat = jnp.transpose(x, (0, 3, 1, 2)).reshape(B, C * Ho * Wo)
    return feat.reshape(B, feat.shape[1], 1, 1)


if __name__ == "__main__":
    key = jax.random.PRNGKey(0)
    kx, k1, k2, k3, k4 = jax.random.split(key, 5)
    # PyTorch-style NCHW input: batch=2, 3 channels, 16x16 spatial.
    x = jax.random.normal(kx, (2, 3, 16, 16), jnp.float32)

    dims = [(3, 64), (64, 64), (64, 64), (64, 64)]        # Conv4 channel plan
    params = [init_block_params(k, ci, co)
              for k, (ci, co) in zip((k1, k2, k3, k4), dims)]

    out = trainable_feature_extractor_forward(x, params)
    out = jax.block_until_ready(out)

    assert out.shape == (2, 64, 1, 1), out.shape
    ref = reference_forward(x, params)
    # bf16 MXU operands with f32 accumulation -> relaxed tolerance vs f32 ref.
    if not jnp.allclose(out, ref, rtol=3e-2, atol=3e-2):
        err = float(jnp.max(jnp.abs(out - ref)))
        raise AssertionError(f"Pallas kernel mismatch vs JAX reference "
                             f"(max abs err {err})")

    print("KERNEL_OK")
</pallas_src>

<mosaic_0001>
module attributes {stable_mosaic.version = 11 : i64} {
  func.func @_conv4_kernel(%arg0: i32, %arg1: memref<1x256x32xbf16, #tpu.memory_space<vmem>>, %arg2: memref<32x64xbf16, #tpu.memory_space<vmem>>, %arg3: memref<576x64xbf16, #tpu.memory_space<vmem>>, %arg4: memref<576x64xbf16, #tpu.memory_space<vmem>>, %arg5: memref<576x64xbf16, #tpu.memory_space<vmem>>, %arg6: memref<4x64xf32, #tpu.memory_space<vmem>>, %arg7: memref<4x64xf32, #tpu.memory_space<vmem>>, %arg8: memref<1x1x64xf32, #tpu.memory_space<vmem>>, %arg9: memref<256x64xf32, #tpu.memory_space<vmem>>, %arg10: memref<160x64xf32, #tpu.memory_space<vmem>>, %arg11: memref<48x64xf32, #tpu.memory_space<vmem>>, %arg12: memref<32x64xf32, #tpu.memory_space<vmem>>) attributes {dimension_semantics = [#tpu.dimension_semantics<parallel>], iteration_bounds = array<i64: 2>, scalar_prefetch = 0 : i64, scratch_operands = 4 : i64, tpu.core_type = #tpu.core_type<tc>, window_params = [{transform_indices = @transform_0, window_bounds = array<i64: 1, 256, 32>}, {pipeline_mode = #tpu.pipeline_mode<synchronous>, transform_indices = @transform_1, window_bounds = array<i64: 32, 64>}, {pipeline_mode = #tpu.pipeline_mode<synchronous>, transform_indices = @transform_2, window_bounds = array<i64: 576, 64>}, {pipeline_mode = #tpu.pipeline_mode<synchronous>, transform_indices = @transform_3, window_bounds = array<i64: 576, 64>}, {pipeline_mode = #tpu.pipeline_mode<synchronous>, transform_indices = @transform_4, window_bounds = array<i64: 576, 64>}, {pipeline_mode = #tpu.pipeline_mode<synchronous>, transform_indices = @transform_5, window_bounds = array<i64: 4, 64>}, {pipeline_mode = #tpu.pipeline_mode<synchronous>, transform_indices = @transform_6, window_bounds = array<i64: 4, 64>}, {transform_indices = @transform_7, window_bounds = array<i64: 1, 1, 64>}]} {
    %cst = arith.constant 0.000000e+00 : f32
    %0 = vector.broadcast %cst : f32 to vector<160x64xf32>
    %c0 = arith.constant 0 : index
    %c0_0 = arith.constant 0 : index
    %1 = vector.load %arg10[%c0, %c0_0] : memref<160x64xf32, #tpu.memory_space<vmem>>, vector<160x64xf32>
    tpu.vector_store %arg10[%c0, %c0_0], %0 {strides = array<i32>} : memref<160x64xf32, #tpu.memory_space<vmem>>, vector<160x64xf32>,
    %cst_1 = arith.constant 0.000000e+00 : f32
    %2 = vector.broadcast %cst_1 : f32 to vector<48x64xf32>
    %c0_2 = arith.constant 0 : index
    %c0_3 = arith.constant 0 : index
    %3 = vector.load %arg11[%c0_2, %c0_3] : memref<48x64xf32, #tpu.memory_space<vmem>>, vector<48x64xf32>
    tpu.vector_store %arg11[%c0_2, %c0_3], %2 {strides = array<i32>} : memref<48x64xf32, #tpu.memory_space<vmem>>, vector<48x64xf32>,
    %cst_4 = arith.constant 0.000000e+00 : f32
    %4 = vector.broadcast %cst_4 : f32 to vector<32x64xf32>
    %c0_5 = arith.constant 0 : index
    %c0_6 = arith.constant 0 : index
    %5 = vector.load %arg12[%c0_5, %c0_6] : memref<32x64xf32, #tpu.memory_space<vmem>>, vector<32x64xf32>
    tpu.vector_store %arg12[%c0_5, %c0_6], %4 {strides = array<i32>} : memref<32x64xf32, #tpu.memory_space<vmem>>, vector<32x64xf32>,
    %c0_7 = arith.constant 0 : index
    %c0_8 = arith.constant 0 : index
    %c0_9 = arith.constant 0 : index
    %6 = vector.load %arg1[%c0_7, %c0_8, %c0_9] : memref<1x256x32xbf16, #tpu.memory_space<vmem>>, vector<1x256x32xbf16>
    %7 = vector.shape_cast %6 : vector<1x256x32xbf16> to vector<256x32xbf16>
    %c0_10 = arith.constant 0 : index
    %c0_11 = arith.constant 0 : index
    %8 = vector.load %arg2[%c0_10, %c0_11] : memref<32x64xbf16, #tpu.memory_space<vmem>>, vector<32x64xbf16>
    %cst_12 = arith.constant dense<0.000000e+00> : vector<256x64xf32>
    %9 = tpu.matmul %7, %8, %cst_12 {dimension_numbers = #tpu.dot_dimension_numbers<[1], [0], [0], [1], [0, 0, 1, 1], [], []>} : vector<256x32xbf16>, vector<32x64xbf16>, vector<256x64xf32> -> vector<256x64xf32>
    %c0_13 = arith.constant 0 : index
    %c0_14 = arith.constant 0 : index
    %10 = vector.load %arg6[%c0_13, %c0_14] : memref<4x64xf32, #tpu.memory_space<vmem>>, vector<1x64xf32>
    %11 = vector.broadcast %10 : vector<1x64xf32> to vector<256x64xf32>
    %12 = arith.mulf %9, %11 : vector<256x64xf32>
    %c0_15 = arith.constant 0 : index
    %c0_16 = arith.constant 0 : index
    %13 = vector.load %arg7[%c0_15, %c0_16] : memref<4x64xf32, #tpu.memory_space<vmem>>, vector<1x64xf32>
    %14 = vector.broadcast %13 : vector<1x64xf32> to vector<256x64xf32>
    %15 = arith.addf %12, %14 : vector<256x64xf32>
    %cst_17 = arith.constant 0.000000e+00 : f32
    %16 = vector.broadcast %cst_17 : f32 to vector<256x64xf32>
    %17 = arith.maximumf %15, %16 : vector<256x64xf32>
    %c255_i32 = arith.constant 255 : i32
    %18 = tpu.dynamic_rotate %17 by %c255_i32 dim 0 : vector<256x64xf32>, i32 -> vector<256x64xf32>
    %19 = arith.maximumf %17, %18 : vector<256x64xf32>
    %c240_i32 = arith.constant 240 : i32
    %20 = tpu.dynamic_rotate %19 by %c240_i32 dim 0 : vector<256x64xf32>, i32 -> vector<256x64xf32>
    %21 = arith.maximumf %19, %20 : vector<256x64xf32>
    %c0_18 = arith.constant 0 : index
    %c0_19 = arith.constant 0 : index
    %22 = vector.load %arg9[%c0_18, %c0_19] : memref<256x64xf32, #tpu.memory_space<vmem>>, vector<256x64xf32>
    tpu.vector_store %arg9[%c0_18, %c0_19], %21 {strides = array<i32>} : memref<256x64xf32, #tpu.memory_space<vmem>>, vector<256x64xf32>,
    %c0_20 = arith.constant 0 : index
    %c0_21 = arith.constant 0 : index
    %23 = tpu.strided_load %arg9[%c0_20, %c0_21] {strides = array<i32: 2, 1>} : memref<256x64xf32, #tpu.memory_space<vmem>>, vector<8x64xf32>
    %c17 = arith.constant 17 : index
    %c0_22 = arith.constant 0 : index
    %24 = vector.load %arg10[%c17, %c0_22] : memref<160x64xf32, #tpu.memory_space<vmem>>, vector<8x64xf32>
    tpu.vector_store %arg10[%c17, %c0_22], %23 {strides = array<i32>} : memref<160x64xf32, #tpu.memory_space<vmem>>, vector<8x64xf32>,
    %c32 = arith.constant 32 : index
    %c0_23 = arith.constant 0 : index
    %25 = tpu.strided_load %arg9[%c32, %c0_23] {strides = array<i32: 2, 1>} : memref<256x64xf32, #tpu.memory_space<vmem>>, vector<8x64xf32>
    %c33 = arith.constant 33 : index
    %c0_24 = arith.constant 0 : index
    %26 = vector.load %arg10[%c33, %c0_24] : memref<160x64xf32, #tpu.memory_space<vmem>>, vector<8x64xf32>
    tpu.vector_store %arg10[%c33, %c0_24], %25 {strides = array<i32>} : memref<160x64xf32, #tpu.memory_space<vmem>>, vector<8x64xf32>,
    %c64 = arith.constant 64 : index
    %c0_25 = arith.constant 0 : index
    %27 = tpu.strided_load %arg9[%c64, %c0_25] {strides = array<i32: 2, 1>} : memref<256x64xf32, #tpu.memory_space<vmem>>, vector<8x64xf32>
    %c49 = arith.constant 49 : index
    %c0_26 = arith.constant 0 : index
    %28 = vector.load %arg10[%c49, %c0_26] : memref<160x64xf32, #tpu.memory_space<vmem>>, vector<8x64xf32>
    tpu.vector_store %arg10[%c49, %c0_26], %27 {strides = array<i32>} : memref<160x64xf32, #tpu.memory_space<vmem>>, vector<8x64xf32>,
    %c96 = arith.constant 96 : index
    %c0_27 = arith.constant 0 : index
    %29 = tpu.strided_load %arg9[%c96, %c0_27] {strides = array<i32: 2, 1>} : memref<256x64xf32, #tpu.memory_space<vmem>>, vector<8x64xf32>
    %c65 = arith.constant 65 : index
    %c0_28 = arith.constant 0 : index
    %30 = vector.load %arg10[%c65, %c0_28] : memref<160x64xf32, #tpu.memory_space<vmem>>, vector<8x64xf32>
    tpu.vector_store %arg10[%c65, %c0_28], %29 {strides = array<i32>} : memref<160x64xf32, #tpu.memory_space<vmem>>, vector<8x64xf32>,
    %c128 = arith.constant 128 : index
    %c0_29 = arith.constant 0 : index
    %31 = tpu.strided_load %arg9[%c128, %c0_29] {strides = array<i32: 2, 1>} : memref<256x64xf32, #tpu.memory_space<vmem>>, vector<8x64xf32>
    %c81 = arith.constant 81 : index
    %c0_30 = arith.constant 0 : index
    %32 = vector.load %arg10[%c81, %c0_30] : memref<160x64xf32, #tpu.memory_space<vmem>>, vector<8x64xf32>
    tpu.vector_store %arg10[%c81, %c0_30], %31 {strides = array<i32>} : memref<160x64xf32, #tpu.memory_space<vmem>>, vector<8x64xf32>,
    %c160 = arith.constant 160 : index
    %c0_31 = arith.constant 0 : index
    %33 = tpu.strided_load %arg9[%c160, %c0_31] {strides = array<i32: 2, 1>} : memref<256x64xf32, #tpu.memory_space<vmem>>, vector<8x64xf32>
    %c97 = arith.constant 97 : index
    %c0_32 = arith.constant 0 : index
    %34 = vector.load %arg10[%c97, %c0_32] : memref<160x64xf32, #tpu.memory_space<vmem>>, vector<8x64xf32>
    tpu.vector_store %arg10[%c97, %c0_32], %33 {strides = array<i32>} : memref<160x64xf32, #tpu.memory_space<vmem>>, vector<8x64xf32>,
    %c192 = arith.constant 192 : index
    %c0_33 = arith.constant 0 : index
    %35 = tpu.strided_load %arg9[%c192, %c0_33] {strides = array<i32: 2, 1>} : memref<256x64xf32, #tpu.memory_space<vmem>>, vector<8x64xf32>
    %c113 = arith.constant 113 : index
    %c0_34 = arith.constant 0 : index
    %36 = vector.load %arg10[%c113, %c0_34] : memref<160x64xf32, #tpu.memory_space<vmem>>, vector<8x64xf32>
    tpu.vector_store %arg10[%c113, %c0_34], %35 {strides = array<i32>} : memref<160x64xf32, #tpu.memory_space<vmem>>, vector<8x64xf32>,
    %c224 = arith.constant 224 : index
    %c0_35 = arith.constant 0 : index
    %37 = tpu.strided_load %arg9[%c224, %c0_35] {strides = array<i32: 2, 1>} : memref<256x64xf32, #tpu.memory_space<vmem>>, vector<8x64xf32>
    %c129 = arith.constant 129 : index
    %c0_36 = arith.constant 0 : index
    %38 = vector.load %arg10[%c129, %c0_36] : memref<160x64xf32, #tpu.memory_space<vmem>>, vector<8x64xf32>
    tpu.vector_store %arg10[%c129, %c0_36], %37 {strides = array<i32>} : memref<160x64xf32, #tpu.memory_space<vmem>>, vector<8x64xf32>,
    %c0_37 = arith.constant 0 : index
    %c0_38 = arith.constant 0 : index
    %39 = vector.load %arg10[%c0_37, %c0_38] : memref<160x64xf32, #tpu.memory_space<vmem>>, vector<160x64xf32>
    %c159_i32 = arith.constant 159 : i32
    %40 = tpu.dynamic_rotate %39 by %c159_i32 dim 0 : vector<160x64xf32>, i32 -> vector<160x64xf32>
    %c158_i32 = arith.constant 158 : i32
    %41 = tpu.dynamic_rotate %39 by %c158_i32 dim 0 : vector<160x64xf32>, i32 -> vector<160x64xf32>
    %cst_39 = arith.constant 0.000000e+00 : f32
    %42 = vector.broadcast %cst_39 : f32 to vector<120x64xf32>
    %43 = vector.extract_strided_slice %39 {offsets = [0, 0], sizes = [120, 64], strides = [1, 1]} : vector<160x64xf32> to vector<120x64xf32>
    %44 = arith.truncf %43 : vector<120x64xf32> to vector<120x64xbf16>
    %c0_40 = arith.constant 0 : index
    %c0_41 = arith.constant 0 : index
    %45 = vector.load %arg3[%c0_40, %c0_41] : memref<576x64xbf16, #tpu.memory_space<vmem>>, vector<64x64xbf16>
    %cst_42 = arith.constant dense<0.000000e+00> : vector<120x64xf32>
    %46 = tpu.matmul %44, %45, %cst_42 {dimension_numbers = #tpu.dot_dimension_numbers<[1], [0], [0], [1], [0, 0, 1, 1], [], []>} : vector<120x64xbf16>, vector<64x64xbf16>, vector<120x64xf32> -> vector<120x64xf32>
    %47 = arith.addf %42, %46 : vector<120x64xf32>
    %48 = vector.extract_strided_slice %39 {offsets = [16, 0], sizes = [120, 64], strides = [1, 1]} : vector<160x64xf32> to vector<120x64xf32>
    %49 = arith.truncf %48 : vector<120x64xf32> to vector<120x64xbf16>
    %c192_43 = arith.constant 192 : index
    %c0_44 = arith.constant 0 : index
    %50 = vector.load %arg3[%c192_43, %c0_44] : memref<576x64xbf16, #tpu.memory_space<vmem>>, vector<64x64xbf16>
    %cst_45 = arith.constant dense<0.000000e+00> : vector<120x64xf32>
    %51 = tpu.matmul %49, %50, %cst_45 {dimension_numbers = #tpu.dot_dimension_numbers<[1], [0], [0], [1], [0, 0, 1, 1], [], []>} : vector<120x64xbf16>, vector<64x64xbf16>, vector<120x64xf32> -> vector<120x64xf32>
    %52 = arith.addf %47, %51 : vector<120x64xf32>
    %53 = vector.extract_strided_slice %39 {offsets = [32, 0], sizes = [120, 64], strides = [1, 1]} : vector<160x64xf32> to vector<120x64xf32>
    %54 = arith.truncf %53 : vector<120x64xf32> to vector<120x64xbf16>
    %c384 = arith.constant 384 : index
    %c0_46 = arith.constant 0 : index
    %55 = vector.load %arg3[%c384, %c0_46] : memref<576x64xbf16, #tpu.memory_space<vmem>>, vector<64x64xbf16>
    %cst_47 = arith.constant dense<0.000000e+00> : vector<120x64xf32>
    %56 = tpu.matmul %54, %55, %cst_47 {dimension_numbers = #tpu.dot_dimension_numbers<[1], [0], [0], [1], [0, 0, 1, 1], [], []>} : vector<120x64xbf16>, vector<64x64xbf16>, vector<120x64xf32> -> vector<120x64xf32>
    %57 = arith.addf %52, %56 : vector<120x64xf32>
    %58 = vector.extract_strided_slice %40 {offsets = [0, 0], sizes = [120, 64], strides = [1, 1]} : vector<160x64xf32> to vector<120x64xf32>
    %59 = arith.truncf %58 : vector<120x64xf32> to vector<120x64xbf16>
    %c64_48 = arith.constant 64 : index
    %c0_49 = arith.constant 0 : index
    %60 = vector.load %arg3[%c64_48, %c0_49] : memref<576x64xbf16, #tpu.memory_space<vmem>>, vector<64x64xbf16>
    %cst_50 = arith.constant dense<0.000000e+00> : vector<120x64xf32>
    %61 = tpu.matmul %59, %60, %cst_50 {dimension_numbers = #tpu.dot_dimension_numbers<[1], [0], [0], [1], [0, 0, 1, 1], [], []>} : vector<120x64xbf16>, vector<64x64xbf16>, vector<120x64xf32> -> vector<120x64xf32>
    %62 = arith.addf %57, %61 : vector<120x64xf32>
    %63 = vector.extract_strided_slice %40 {offsets = [16, 0], sizes = [120, 64], strides = [1, 1]} : vector<160x64xf32> to vector<120x64xf32>
    %64 = arith.truncf %63 : vector<120x64xf32> to vector<120x64xbf16>
    %c256 = arith.constant 256 : index
    %c0_51 = arith.constant 0 : index
    %65 = vector.load %arg3[%c256, %c0_51] : memref<576x64xbf16, #tpu.memory_space<vmem>>, vector<64x64xbf16>
    %cst_52 = arith.constant dense<0.000000e+00> : vector<120x64xf32>
    %66 = tpu.matmul %64, %65, %cst_52 {dimension_numbers = #tpu.dot_dimension_numbers<[1], [0], [0], [1], [0, 0, 1, 1], [], []>} : vector<120x64xbf16>, vector<64x64xbf16>, vector<120x64xf32> -> vector<120x64xf32>
    %67 = arith.addf %62, %66 : vector<120x64xf32>
    %68 = vector.extract_strided_slice %40 {offsets = [32, 0], sizes = [120, 64], strides = [1, 1]} : vector<160x64xf32> to vector<120x64xf32>
    %69 = arith.truncf %68 : vector<120x64xf32> to vector<120x64xbf16>
    %c448 = arith.constant 448 : index
    %c0_53 = arith.constant 0 : index
    %70 = vector.load %arg3[%c448, %c0_53] : memref<576x64xbf16, #tpu.memory_space<vmem>>, vector<64x64xbf16>
    %cst_54 = arith.constant dense<0.000000e+00> : vector<120x64xf32>
    %71 = tpu.matmul %69, %70, %cst_54 {dimension_numbers = #tpu.dot_dimension_numbers<[1], [0], [0], [1], [0, 0, 1, 1], [], []>} : vector<120x64xbf16>, vector<64x64xbf16>, vector<120x64xf32> -> vector<120x64xf32>
    %72 = arith.addf %67, %71 : vector<120x64xf32>
    %73 = vector.extract_strided_slice %41 {offsets = [0, 0], sizes = [120, 64], strides = [1, 1]} : vector<160x64xf32> to vector<120x64xf32>
    %74 = arith.truncf %73 : vector<120x64xf32> to vector<120x64xbf16>
    %c128_55 = arith.constant 128 : index
    %c0_56 = arith.constant 0 : index
    %75 = vector.load %arg3[%c128_55, %c0_56] : memref<576x64xbf16, #tpu.memory_space<vmem>>, vector<64x64xbf16>
    %cst_57 = arith.constant dense<0.000000e+00> : vector<120x64xf32>
    %76 = tpu.matmul %74, %75, %cst_57 {dimension_numbers = #tpu.dot_dimension_numbers<[1], [0], [0], [1], [0, 0, 1, 1], [], []>} : vector<120x64xbf16>, vector<64x64xbf16>, vector<120x64xf32> -> vector<120x64xf32>
    %77 = arith.addf %72, %76 : vector<120x64xf32>
    %78 = vector.extract_strided_slice %41 {offsets = [16, 0], sizes = [120, 64], strides = [1, 1]} : vector<160x64xf32> to vector<120x64xf32>
    %79 = arith.truncf %78 : vector<120x64xf32> to vector<120x64xbf16>
    %c320 = arith.constant 320 : index
    %c0_58 = arith.constant 0 : index
    %80 = vector.load %arg3[%c320, %c0_58] : memref<576x64xbf16, #tpu.memory_space<vmem>>, vector<64x64xbf16>
    %cst_59 = arith.constant dense<0.000000e+00> : vector<120x64xf32>
    %81 = tpu.matmul %79, %80, %cst_59 {dimension_numbers = #tpu.dot_dimension_numbers<[1], [0], [0], [1], [0, 0, 1, 1], [], []>} : vector<120x64xbf16>, vector<64x64xbf16>, vector<120x64xf32> -> vector<120x64xf32>
    %82 = arith.addf %77, %81 : vector<120x64xf32>
    %83 = vector.extract_strided_slice %41 {offsets = [32, 0], sizes = [120, 64], strides = [1, 1]} : vector<160x64xf32> to vector<120x64xf32>
    %84 = arith.truncf %83 : vector<120x64xf32> to vector<120x64xbf16>
    %c512 = arith.constant 512 : index
    %c0_60 = arith.constant 0 : index
    %85 = vector.load %arg3[%c512, %c0_60] : memref<576x64xbf16, #tpu.memory_space<vmem>>, vector<64x64xbf16>
    %cst_61 = arith.constant dense<0.000000e+00> : vector<120x64xf32>
    %86 = tpu.matmul %84, %85, %cst_61 {dimension_numbers = #tpu.dot_dimension_numbers<[1], [0], [0], [1], [0, 0, 1, 1], [], []>} : vector<120x64xbf16>, vector<64x64xbf16>, vector<120x64xf32> -> vector<120x64xf32>
    %87 = arith.addf %82, %86 : vector<120x64xf32>
    %c1 = arith.constant 1 : index
    %c0_62 = arith.constant 0 : index
    %88 = vector.load %arg6[%c1, %c0_62] : memref<4x64xf32, #tpu.memory_space<vmem>>, vector<1x64xf32>
    %89 = vector.broadcast %88 : vector<1x64xf32> to vector<120x64xf32>
    %90 = arith.mulf %87, %89 : vector<120x64xf32>
    %c1_63 = arith.constant 1 : index
    %c0_64 = arith.constant 0 : index
    %91 = vector.load %arg7[%c1_63, %c0_64] : memref<4x64xf32, #tpu.memory_space<vmem>>, vector<1x64xf32>
    %92 = vector.broadcast %91 : vector<1x64xf32> to vector<120x64xf32>
    %93 = arith.addf %90, %92 : vector<120x64xf32>
    %cst_65 = arith.constant 0.000000e+00 : f32
    %94 = vector.broadcast %cst_65 : f32 to vector<120x64xf32>
    %95 = arith.maximumf %93, %94 : vector<120x64xf32>
    %c119_i32 = arith.constant 119 : i32
    %96 = tpu.dynamic_rotate %95 by %c119_i32 dim 0 : vector<120x64xf32>, i32 -> vector<120x64xf32>
    %97 = arith.maximumf %95, %96 : vector<120x64xf32>
    %c104_i32 = arith.constant 104 : i32
    %98 = tpu.dynamic_rotate %97 by %c104_i32 dim 0 : vector<120x64xf32>, i32 -> vector<120x64xf32>
    %99 = arith.maximumf %97, %98 : vector<120x64xf32>
    %c0_66 = arith.constant 0 : index
    %c0_67 = arith.constant 0 : index
    %100 = vector.load %arg9[%c0_66, %c0_67] : memref<256x64xf32, #tpu.memory_space<vmem>>, vector<120x64xf32>
    tpu.vector_store %arg9[%c0_66, %c0_67], %99 {strides = array<i32>} : memref<256x64xf32, #tpu.memory_space<vmem>>, vector<120x64xf32>,
    %c0_68 = arith.constant 0 : index
    %c0_69 = arith.constant 0 : index
    %101 = tpu.strided_load %arg9[%c0_68, %c0_69] {strides = array<i32: 2, 1>} : memref<256x64xf32, #tpu.memory_space<vmem>>, vector<4x64xf32>
    %c9 = arith.constant 9 : index
    %c0_70 = arith.constant 0 : index
    %102 = vector.load %arg11[%c9, %c0_70] : memref<48x64xf32, #tpu.memory_space<vmem>>, vector<4x64xf32>
    tpu.vector_store %arg11[%c9, %c0_70], %101 {strides = array<i32>} : memref<48x64xf32, #tpu.memory_space<vmem>>, vector<4x64xf32>,
    %c32_71 = arith.constant 32 : index
    %c0_72 = arith.constant 0 : index
    %103 = tpu.strided_load %arg9[%c32_71, %c0_72] {strides = array<i32: 2, 1>} : memref<256x64xf32, #tpu.memory_space<vmem>>, vector<4x64xf32>
    %c17_73 = arith.constant 17 : index
    %c0_74 = arith.constant 0 : index
    %104 = vector.load %arg11[%c17_73, %c0_74] : memref<48x64xf32, #tpu.memory_space<vmem>>, vector<4x64xf32>
    tpu.vector_store %arg11[%c17_73, %c0_74], %103 {strides = array<i32>} : memref<48x64xf32, #tpu.memory_space<vmem>>, vector<4x64xf32>,
    %c64_75 = arith.constant 64 : index
    %c0_76 = arith.constant 0 : index
    %105 = tpu.strided_load %arg9[%c64_75, %c0_76] {strides = array<i32: 2, 1>} : memref<256x64xf32, #tpu.memory_space<vmem>>, vector<4x64xf32>
    %c25 = arith.constant 25 : index
    %c0_77 = arith.constant 0 : index
    %106 = vector.load %arg11[%c25, %c0_77] : memref<48x64xf32, #tpu.memory_space<vmem>>, vector<4x64xf32>
    tpu.vector_store %arg11[%c25, %c0_77], %105 {strides = array<i32>} : memref<48x64xf32, #tpu.memory_space<vmem>>, vector<4x64xf32>,
    %c96_78 = arith.constant 96 : index
    %c0_79 = arith.constant 0 : index
    %107 = tpu.strided_load %arg9[%c96_78, %c0_79] {strides = array<i32: 2, 1>} : memref<256x64xf32, #tpu.memory_space<vmem>>, vector<4x64xf32>
    %c33_80 = arith.constant 33 : index
    %c0_81 = arith.constant 0 : index
    %108 = vector.load %arg11[%c33_80, %c0_81] : memref<48x64xf32, #tpu.memory_space<vmem>>, vector<4x64xf32>
    tpu.vector_store %arg11[%c33_80, %c0_81], %107 {strides = array<i32>} : memref<48x64xf32, #tpu.memory_space<vmem>>, vector<4x64xf32>,
    %c0_82 = arith.constant 0 : index
    %c0_83 = arith.constant 0 : index
    %109 = vector.load %arg11[%c0_82, %c0_83] : memref<48x64xf32, #tpu.memory_space<vmem>>, vector<48x64xf32>
    %c47_i32 = arith.constant 47 : i32
    %110 = tpu.dynamic_rotate %109 by %c47_i32 dim 0 : vector<48x64xf32>, i32 -> vector<48x64xf32>
    %c46_i32 = arith.constant 46 : i32
    %111 = tpu.dynamic_rotate %109 by %c46_i32 dim 0 : vector<48x64xf32>, i32 -> vector<48x64xf32>
    %cst_84 = arith.constant 0.000000e+00 : f32
    %112 = vector.broadcast %cst_84 : f32 to vector<32x64xf32>
    %113 = vector.extract_strided_slice %109 {offsets = [0, 0], sizes = [32, 64], strides = [1, 1]} : vector<48x64xf32> to vector<32x64xf32>
    %114 = arith.truncf %113 : vector<32x64xf32> to vector<32x64xbf16>
    %c0_85 = arith.constant 0 : index
    %c0_86 = arith.constant 0 : index
    %115 = vector.load %arg4[%c0_85, %c0_86] : memref<576x64xbf16, #tpu.memory_space<vmem>>, vector<64x64xbf16>
    %cst_87 = arith.constant dense<0.000000e+00> : vector<32x64xf32>
    %116 = tpu.matmul %114, %115, %cst_87 {dimension_numbers = #tpu.dot_dimension_numbers<[1], [0], [0], [1], [0, 0, 1, 1], [], []>} : vector<32x64xbf16>, vector<64x64xbf16>, vector<32x64xf32> -> vector<32x64xf32>
    %117 = arith.addf %112, %116 : vector<32x64xf32>
    %118 = vector.extract_strided_slice %109 {offsets = [8, 0], sizes = [32, 64], strides = [1, 1]} : vector<48x64xf32> to vector<32x64xf32>
    %119 = arith.truncf %118 : vector<32x64xf32> to vector<32x64xbf16>
    %c192_88 = arith.constant 192 : index
    %c0_89 = arith.constant 0 : index
    %120 = vector.load %arg4[%c192_88, %c0_89] : memref<576x64xbf16, #tpu.memory_space<vmem>>, vector<64x64xbf16>
    %cst_90 = arith.constant dense<0.000000e+00> : vector<32x64xf32>
    %121 = tpu.matmul %119, %120, %cst_90 {dimension_numbers = #tpu.dot_dimension_numbers<[1], [0], [0], [1], [0, 0, 1, 1], [], []>} : vector<32x64xbf16>, vector<64x64xbf16>, vector<32x64xf32> -> vector<32x64xf32>
    %122 = arith.addf %117, %121 : vector<32x64xf32>
    %123 = vector.extract_strided_slice %109 {offsets = [16, 0], sizes = [32, 64], strides = [1, 1]} : vector<48x64xf32> to vector<32x64xf32>
    %124 = arith.truncf %123 : vector<32x64xf32> to vector<32x64xbf16>
    %c384_91 = arith.constant 384 : index
    %c0_92 = arith.constant 0 : index
    %125 = vector.load %arg4[%c384_91, %c0_92] : memref<576x64xbf16, #tpu.memory_space<vmem>>, vector<64x64xbf16>
    %cst_93 = arith.constant dense<0.000000e+00> : vector<32x64xf32>
    %126 = tpu.matmul %124, %125, %cst_93 {dimension_numbers = #tpu.dot_dimension_numbers<[1], [0], [0], [1], [0, 0, 1, 1], [], []>} : vector<32x64xbf16>, vector<64x64xbf16>, vector<32x64xf32> -> vector<32x64xf32>
    %127 = arith.addf %122, %126 : vector<32x64xf32>
    %128 = vector.extract_strided_slice %110 {offsets = [0, 0], sizes = [32, 64], strides = [1, 1]} : vector<48x64xf32> to vector<32x64xf32>
    %129 = arith.truncf %128 : vector<32x64xf32> to vector<32x64xbf16>
    %c64_94 = arith.constant 64 : index
    %c0_95 = arith.constant 0 : index
    %130 = vector.load %arg4[%c64_94, %c0_95] : memref<576x64xbf16, #tpu.memory_space<vmem>>, vector<64x64xbf16>
    %cst_96 = arith.constant dense<0.000000e+00> : vector<32x64xf32>
    %131 = tpu.matmul %129, %130, %cst_96 {dimension_numbers = #tpu.dot_dimension_numbers<[1], [0], [0], [1], [0, 0, 1, 1], [], []>} : vector<32x64xbf16>, vector<64x64xbf16>, vector<32x64xf32> -> vector<32x64xf32>
    %132 = arith.addf %127, %131 : vector<32x64xf32>
    %133 = vector.extract_strided_slice %110 {offsets = [8, 0], sizes = [32, 64], strides = [1, 1]} : vector<48x64xf32> to vector<32x64xf32>
    %134 = arith.truncf %133 : vector<32x64xf32> to vector<32x64xbf16>
    %c256_97 = arith.constant 256 : index
    %c0_98 = arith.constant 0 : index
    %135 = vector.load %arg4[%c256_97, %c0_98] : memref<576x64xbf16, #tpu.memory_space<vmem>>, vector<64x64xbf16>
    %cst_99 = arith.constant dense<0.000000e+00> : vector<32x64xf32>
    %136 = tpu.matmul %134, %135, %cst_99 {dimension_numbers = #tpu.dot_dimension_numbers<[1], [0], [0], [1], [0, 0, 1, 1], [], []>} : vector<32x64xbf16>, vector<64x64xbf16>, vector<32x64xf32> -> vector<32x64xf32>
    %137 = arith.addf %132, %136 : vector<32x64xf32>
    %138 = vector.extract_strided_slice %110 {offsets = [16, 0], sizes = [32, 64], strides = [1, 1]} : vector<48x64xf32> to vector<32x64xf32>
    %139 = arith.truncf %138 : vector<32x64xf32> to vector<32x64xbf16>
    %c448_100 = arith.constant 448 : index
    %c0_101 = arith.constant 0 : index
    %140 = vector.load %arg4[%c448_100, %c0_101] : memref<576x64xbf16, #tpu.memory_space<vmem>>, vector<64x64xbf16>
    %cst_102 = arith.constant dense<0.000000e+00> : vector<32x64xf32>
    %141 = tpu.matmul %139, %140, %cst_102 {dimension_numbers = #tpu.dot_dimension_numbers<[1], [0], [0], [1], [0, 0, 1, 1], [], []>} : vector<32x64xbf16>, vector<64x64xbf16>, vector<32x64xf32> -> vector<32x64xf32>
    %142 = arith.addf %137, %141 : vector<32x64xf32>
    %143 = vector.extract_strided_slice %111 {offsets = [0, 0], sizes = [32, 64], strides = [1, 1]} : vector<48x64xf32> to vector<32x64xf32>
    %144 = arith.truncf %143 : vector<32x64xf32> to vector<32x64xbf16>
    %c128_103 = arith.constant 128 : index
    %c0_104 = arith.constant 0 : index
    %145 = vector.load %arg4[%c128_103, %c0_104] : memref<576x64xbf16, #tpu.memory_space<vmem>>, vector<64x64xbf16>
    %cst_105 = arith.constant dense<0.000000e+00> : vector<32x64xf32>
    %146 = tpu.matmul %144, %145, %cst_105 {dimension_numbers = #tpu.dot_dimension_numbers<[1], [0], [0], [1], [0, 0, 1, 1], [], []>} : vector<32x64xbf16>, vector<64x64xbf16>, vector<32x64xf32> -> vector<32x64xf32>
    %147 = arith.addf %142, %146 : vector<32x64xf32>
    %148 = vector.extract_strided_slice %111 {offsets = [8, 0], sizes = [32, 64], strides = [1, 1]} : vector<48x64xf32> to vector<32x64xf32>
    %149 = arith.truncf %148 : vector<32x64xf32> to vector<32x64xbf16>
    %c320_106 = arith.constant 320 : index
    %c0_107 = arith.constant 0 : index
    %150 = vector.load %arg4[%c320_106, %c0_107] : memref<576x64xbf16, #tpu.memory_space<vmem>>, vector<64x64xbf16>
    %cst_108 = arith.constant dense<0.000000e+00> : vector<32x64xf32>
    %151 = tpu.matmul %149, %150, %cst_108 {dimension_numbers = #tpu.dot_dimension_numbers<[1], [0], [0], [1], [0, 0, 1, 1], [], []>} : vector<32x64xbf16>, vector<64x64xbf16>, vector<32x64xf32> -> vector<32x64xf32>
    %152 = arith.addf %147, %151 : vector<32x64xf32>
    %153 = vector.extract_strided_slice %111 {offsets = [16, 0], sizes = [32, 64], strides = [1, 1]} : vector<48x64xf32> to vector<32x64xf32>
    %154 = arith.truncf %153 : vector<32x64xf32> to vector<32x64xbf16>
    %c512_109 = arith.constant 512 : index
    %c0_110 = arith.constant 0 : index
    %155 = vector.load %arg4[%c512_109, %c0_110] : memref<576x64xbf16, #tpu.memory_space<vmem>>, vector<64x64xbf16>
    %cst_111 = arith.constant dense<0.000000e+00> : vector<32x64xf32>
    %156 = tpu.matmul %154, %155, %cst_111 {dimension_numbers = #tpu.dot_dimension_numbers<[1], [0], [0], [1], [0, 0, 1, 1], [], []>} : vector<32x64xbf16>, vector<64x64xbf16>, vector<32x64xf32> -> vector<32x64xf32>
    %157 = arith.addf %152, %156 : vector<32x64xf32>
    %c2 = arith.constant 2 : index
    %c0_112 = arith.constant 0 : index
    %158 = vector.load %arg6[%c2, %c0_112] : memref<4x64xf32, #tpu.memory_space<vmem>>, vector<1x64xf32>
    %159 = vector.broadcast %158 : vector<1x64xf32> to vector<32x64xf32>
    %160 = arith.mulf %157, %159 : vector<32x64xf32>
    %c2_113 = arith.constant 2 : index
    %c0_114 = arith.constant 0 : index
    %161 = vector.load %arg7[%c2_113, %c0_114] : memref<4x64xf32, #tpu.memory_space<vmem>>, vector<1x64xf32>
    %162 = vector.broadcast %161 : vector<1x64xf32> to vector<32x64xf32>
    %163 = arith.addf %160, %162 : vector<32x64xf32>
    %cst_115 = arith.constant 0.000000e+00 : f32
    %164 = vector.broadcast %cst_115 : f32 to vector<32x64xf32>
    %165 = arith.maximumf %163, %164 : vector<32x64xf32>
    %c31_i32 = arith.constant 31 : i32
    %166 = tpu.dynamic_rotate %165 by %c31_i32 dim 0 : vector<32x64xf32>, i32 -> vector<32x64xf32>
    %167 = arith.maximumf %165, %166 : vector<32x64xf32>
    %c24_i32 = arith.constant 24 : i32
    %168 = tpu.dynamic_rotate %167 by %c24_i32 dim 0 : vector<32x64xf32>, i32 -> vector<32x64xf32>
    %169 = arith.maximumf %167, %168 : vector<32x64xf32>
    %c0_116 = arith.constant 0 : index
    %c0_117 = arith.constant 0 : index
    %170 = vector.load %arg9[%c0_116, %c0_117] : memref<256x64xf32, #tpu.memory_space<vmem>>, vector<32x64xf32>
    tpu.vector_store %arg9[%c0_116, %c0_117], %169 {strides = array<i32>} : memref<256x64xf32, #tpu.memory_space<vmem>>, vector<32x64xf32>,
    %c0_118 = arith.constant 0 : index
    %c0_119 = arith.constant 0 : index
    %171 = tpu.strided_load %arg9[%c0_118, %c0_119] {strides = array<i32: 2, 1>} : memref<256x64xf32, #tpu.memory_space<vmem>>, vector<2x64xf32>
    %c9_120 = arith.constant 9 : index
    %c0_121 = arith.constant 0 : index
    %172 = vector.load %arg12[%c9_120, %c0_121] : memref<32x64xf32, #tpu.memory_space<vmem>>, vector<2x64xf32>
    tpu.vector_store %arg12[%c9_120, %c0_121], %171 {strides = array<i32>} : memref<32x64xf32, #tpu.memory_space<vmem>>, vector<2x64xf32>,
    %c16 = arith.constant 16 : index
    %c0_122 = arith.constant 0 : index
    %173 = tpu.strided_load %arg9[%c16, %c0_122] {strides = array<i32: 2, 1>} : memref<256x64xf32, #tpu.memory_space<vmem>>, vector<2x64xf32>
    %c17_123 = arith.constant 17 : index
    %c0_124 = arith.constant 0 : index
    %174 = vector.load %arg12[%c17_123, %c0_124] : memref<32x64xf32, #tpu.memory_space<vmem>>, vector<2x64xf32>
    tpu.vector_store %arg12[%c17_123, %c0_124], %173 {strides = array<i32>} : memref<32x64xf32, #tpu.memory_space<vmem>>, vector<2x64xf32>,
    %c0_125 = arith.constant 0 : index
    %c0_126 = arith.constant 0 : index
    %175 = vector.load %arg12[%c0_125, %c0_126] : memref<32x64xf32, #tpu.memory_space<vmem>>, vector<32x64xf32>
    %c31_i32_127 = arith.constant 31 : i32
    %176 = tpu.dynamic_rotate %175 by %c31_i32_127 dim 0 : vector<32x64xf32>, i32 -> vector<32x64xf32>
    %c30_i32 = arith.constant 30 : i32
    %177 = tpu.dynamic_rotate %175 by %c30_i32 dim 0 : vector<32x64xf32>, i32 -> vector<32x64xf32>
    %cst_128 = arith.constant 0.000000e+00 : f32
    %178 = vector.broadcast %cst_128 : f32 to vector<16x64xf32>
    %179 = vector.extract_strided_slice %175 {offsets = [0, 0], sizes = [16, 64], strides = [1, 1]} : vector<32x64xf32> to vector<16x64xf32>
    %180 = arith.truncf %179 : vector<16x64xf32> to vector<16x64xbf16>
    %c0_129 = arith.constant 0 : index
    %c0_130 = arith.constant 0 : index
    %181 = vector.load %arg5[%c0_129, %c0_130] : memref<576x64xbf16, #tpu.memory_space<vmem>>, vector<64x64xbf16>
    %cst_131 = arith.constant dense<0.000000e+00> : vector<16x64xf32>
    %182 = tpu.matmul %180, %181, %cst_131 {dimension_numbers = #tpu.dot_dimension_numbers<[1], [0], [0], [1], [0, 0, 1, 1], [], []>} : vector<16x64xbf16>, vector<64x64xbf16>, vector<16x64xf32> -> vector<16x64xf32>
    %183 = arith.addf %178, %182 : vector<16x64xf32>
    %184 = vector.extract_strided_slice %175 {offsets = [8, 0], sizes = [16, 64], strides = [1, 1]} : vector<32x64xf32> to vector<16x64xf32>
    %185 = arith.truncf %184 : vector<16x64xf32> to vector<16x64xbf16>
    %c192_132 = arith.constant 192 : index
    %c0_133 = arith.constant 0 : index
    %186 = vector.load %arg5[%c192_132, %c0_133] : memref<576x64xbf16, #tpu.memory_space<vmem>>, vector<64x64xbf16>
    %cst_134 = arith.constant dense<0.000000e+00> : vector<16x64xf32>
    %187 = tpu.matmul %185, %186, %cst_134 {dimension_numbers = #tpu.dot_dimension_numbers<[1], [0], [0], [1], [0, 0, 1, 1], [], []>} : vector<16x64xbf16>, vector<64x64xbf16>, vector<16x64xf32> -> vector<16x64xf32>
    %188 = arith.addf %183, %187 : vector<16x64xf32>
    %189 = vector.extract_strided_slice %175 {offsets = [16, 0], sizes = [16, 64], strides = [1, 1]} : vector<32x64xf32> to vector<16x64xf32>
    %190 = arith.truncf %189 : vector<16x64xf32> to vector<16x64xbf16>
    %c384_135 = arith.constant 384 : index
    %c0_136 = arith.constant 0 : index
    %191 = vector.load %arg5[%c384_135, %c0_136] : memref<576x64xbf16, #tpu.memory_space<vmem>>, vector<64x64xbf16>
    %cst_137 = arith.constant dense<0.000000e+00> : vector<16x64xf32>
    %192 = tpu.matmul %190, %191, %cst_137 {dimension_numbers = #tpu.dot_dimension_numbers<[1], [0], [0], [1], [0, 0, 1, 1], [], []>} : vector<16x64xbf16>, vector<64x64xbf16>, vector<16x64xf32> -> vector<16x64xf32>
    %193 = arith.addf %188, %192 : vector<16x64xf32>
    %194 = vector.extract_strided_slice %176 {offsets = [0, 0], sizes = [16, 64], strides = [1, 1]} : vector<32x64xf32> to vector<16x64xf32>
    %195 = arith.truncf %194 : vector<16x64xf32> to vector<16x64xbf16>
    %c64_138 = arith.constant 64 : index
    %c0_139 = arith.constant 0 : index
    %196 = vector.load %arg5[%c64_138, %c0_139] : memref<576x64xbf16, #tpu.memory_space<vmem>>, vector<64x64xbf16>
    %cst_140 = arith.constant dense<0.000000e+00> : vector<16x64xf32>
    %197 = tpu.matmul %195, %196, %cst_140 {dimension_numbers = #tpu.dot_dimension_numbers<[1], [0], [0], [1], [0, 0, 1, 1], [], []>} : vector<16x64xbf16>, vector<64x64xbf16>, vector<16x64xf32> -> vector<16x64xf32>
    %198 = arith.addf %193, %197 : vector<16x64xf32>
    %199 = vector.extract_strided_slice %176 {offsets = [8, 0], sizes = [16, 64], strides = [1, 1]} : vector<32x64xf32> to vector<16x64xf32>
    %200 = arith.truncf %199 : vector<16x64xf32> to vector<16x64xbf16>
    %c256_141 = arith.constant 256 : index
    %c0_142 = arith.constant 0 : index
    %201 = vector.load %arg5[%c256_141, %c0_142] : memref<576x64xbf16, #tpu.memory_space<vmem>>, vector<64x64xbf16>
    %cst_143 = arith.constant dense<0.000000e+00> : vector<16x64xf32>
    %202 = tpu.matmul %200, %201, %cst_143 {dimension_numbers = #tpu.dot_dimension_numbers<[1], [0], [0], [1], [0, 0, 1, 1], [], []>} : vector<16x64xbf16>, vector<64x64xbf16>, vector<16x64xf32> -> vector<16x64xf32>
    %203 = arith.addf %198, %202 : vector<16x64xf32>
    %204 = vector.extract_strided_slice %176 {offsets = [16, 0], sizes = [16, 64], strides = [1, 1]} : vector<32x64xf32> to vector<16x64xf32>
    %205 = arith.truncf %204 : vector<16x64xf32> to vector<16x64xbf16>
    %c448_144 = arith.constant 448 : index
    %c0_145 = arith.constant 0 : index
    %206 = vector.load %arg5[%c448_144, %c0_145] : memref<576x64xbf16, #tpu.memory_space<vmem>>, vector<64x64xbf16>
    %cst_146 = arith.constant dense<0.000000e+00> : vector<16x64xf32>
    %207 = tpu.matmul %205, %206, %cst_146 {dimension_numbers = #tpu.dot_dimension_numbers<[1], [0], [0], [1], [0, 0, 1, 1], [], []>} : vector<16x64xbf16>, vector<64x64xbf16>, vector<16x64xf32> -> vector<16x64xf32>
    %208 = arith.addf %203, %207 : vector<16x64xf32>
    %209 = vector.extract_strided_slice %177 {offsets = [0, 0], sizes = [16, 64], strides = [1, 1]} : vector<32x64xf32> to vector<16x64xf32>
    %210 = arith.truncf %209 : vector<16x64xf32> to vector<16x64xbf16>
    %c128_147 = arith.constant 128 : index
    %c0_148 = arith.constant 0 : index
    %211 = vector.load %arg5[%c128_147, %c0_148] : memref<576x64xbf16, #tpu.memory_space<vmem>>, vector<64x64xbf16>
    %cst_149 = arith.constant dense<0.000000e+00> : vector<16x64xf32>
    %212 = tpu.matmul %210, %211, %cst_149 {dimension_numbers = #tpu.dot_dimension_numbers<[1], [0], [0], [1], [0, 0, 1, 1], [], []>} : vector<16x64xbf16>, vector<64x64xbf16>, vector<16x64xf32> -> vector<16x64xf32>
    %213 = arith.addf %208, %212 : vector<16x64xf32>
    %214 = vector.extract_strided_slice %177 {offsets = [8, 0], sizes = [16, 64], strides = [1, 1]} : vector<32x64xf32> to vector<16x64xf32>
    %215 = arith.truncf %214 : vector<16x64xf32> to vector<16x64xbf16>
    %c320_150 = arith.constant 320 : index
    %c0_151 = arith.constant 0 : index
    %216 = vector.load %arg5[%c320_150, %c0_151] : memref<576x64xbf16, #tpu.memory_space<vmem>>, vector<64x64xbf16>
    %cst_152 = arith.constant dense<0.000000e+00> : vector<16x64xf32>
    %217 = tpu.matmul %215, %216, %cst_152 {dimension_numbers = #tpu.dot_dimension_numbers<[1], [0], [0], [1], [0, 0, 1, 1], [], []>} : vector<16x64xbf16>, vector<64x64xbf16>, vector<16x64xf32> -> vector<16x64xf32>
    %218 = arith.addf %213, %217 : vector<16x64xf32>
    %219 = vector.extract_strided_slice %177 {offsets = [16, 0], sizes = [16, 64], strides = [1, 1]} : vector<32x64xf32> to vector<16x64xf32>
    %220 = arith.truncf %219 : vector<16x64xf32> to vector<16x64xbf16>
    %c512_153 = arith.constant 512 : index
    %c0_154 = arith.constant 0 : index
    %221 = vector.load %arg5[%c512_153, %c0_154] : memref<576x64xbf16, #tpu.memory_space<vmem>>, vector<64x64xbf16>
    %cst_155 = arith.constant dense<0.000000e+00> : vector<16x64xf32>
    %222 = tpu.matmul %220, %221, %cst_155 {dimension_numbers = #tpu.dot_dimension_numbers<[1], [0], [0], [1], [0, 0, 1, 1], [], []>} : vector<16x64xbf16>, vector<64x64xbf16>, vector<16x64xf32> -> vector<16x64xf32>
    %223 = arith.addf %218, %222 : vector<16x64xf32>
    %c3 = arith.constant 3 : index
    %c0_156 = arith.constant 0 : index
    %224 = vector.load %arg6[%c3, %c0_156] : memref<4x64xf32, #tpu.memory_space<vmem>>, vector<1x64xf32>
    %225 = vector.broadcast %224 : vector<1x64xf32> to vector<16x64xf32>
    %226 = arith.mulf %223, %225 : vector<16x64xf32>
    %c3_157 = arith.constant 3 : index
    %c0_158 = arith.constant 0 : index
    %227 = vector.load %arg7[%c3_157, %c0_158] : memref<4x64xf32, #tpu.memory_space<vmem>>, vector<1x64xf32>
    %228 = vector.broadcast %227 : vector<1x64xf32> to vector<16x64xf32>
    %229 = arith.addf %226, %228 : vector<16x64xf32>
    %cst_159 = arith.constant 0.000000e+00 : f32
    %230 = vector.broadcast %cst_159 : f32 to vector<16x64xf32>
    %231 = arith.maximumf %229, %230 : vector<16x64xf32>
    %c15_i32 = arith.constant 15 : i32
    %232 = tpu.dynamic_rotate %231 by %c15_i32 dim 0 : vector<16x64xf32>, i32 -> vector<16x64xf32>
    %233 = arith.maximumf %231, %232 : vector<16x64xf32>
    %c8_i32 = arith.constant 8 : i32
    %234 = tpu.dynamic_rotate %233 by %c8_i32 dim 0 : vector<16x64xf32>, i32 -> vector<16x64xf32>
    %235 = arith.maximumf %233, %234 : vector<16x64xf32>
    %c0_160 = arith.constant 0 : index
    %c0_161 = arith.constant 0 : index
    %236 = vector.load %arg9[%c0_160, %c0_161] : memref<256x64xf32, #tpu.memory_space<vmem>>, vector<16x64xf32>
    tpu.vector_store %arg9[%c0_160, %c0_161], %235 {strides = array<i32>} : memref<256x64xf32, #tpu.memory_space<vmem>>, vector<16x64xf32>,
    %c0_162 = arith.constant 0 : index
    %c0_163 = arith.constant 0 : index
    %237 = vector.load %arg9[%c0_162, %c0_163] : memref<256x64xf32, #tpu.memory_space<vmem>>, vector<1x64xf32>
    %c0_164 = arith.constant 0 : index
    %c0_165 = arith.constant 0 : index
    %c0_166 = arith.constant 0 : index
    %238 = vector.load %arg8[%c0_164, %c0_165, %c0_166] : memref<1x1x64xf32, #tpu.memory_space<vmem>>, vector<1x1x64xf32>
    %239 = vector.shape_cast %238 : vector<1x1x64xf32> to vector<1x64xf32>
    %240 = vector.shape_cast %237 : vector<1x64xf32> to vector<1x1x64xf32>
    tpu.vector_store %arg8[%c0_164, %c0_165, %c0_166], %240 {strides = array<i32>} : memref<1x1x64xf32, #tpu.memory_space<vmem>>, vector<1x1x64xf32>,
    return
  }
  func.func @transform_0(%arg0: i32) -> (i32, i32, i32) {
    %c0_i32 = arith.constant 0 : i32
    %c0_i32_0 = arith.constant 0 : i32
    %c0_i32_1 = arith.constant 0 : i32
    return %arg0, %c0_i32, %c0_i32_0 : i32, i32, i32
  }
  func.func @transform_1(%arg0: i32) -> (i32, i32) {
    %c0_i32 = arith.constant 0 : i32
    %c0_i32_0 = arith.constant 0 : i32
    %c0_i32_1 = arith.constant 0 : i32
    return %c0_i32, %c0_i32_0 : i32, i32
  }
  func.func @transform_2(%arg0: i32) -> (i32, i32) {
    %c0_i32 = arith.constant 0 : i32
    %c0_i32_0 = arith.constant 0 : i32
    %c0_i32_1 = arith.constant 0 : i32
    return %c0_i32, %c0_i32_0 : i32, i32
  }
  func.func @transform_3(%arg0: i32) -> (i32, i32) {
    %c0_i32 = arith.constant 0 : i32
    %c0_i32_0 = arith.constant 0 : i32
    %c0_i32_1 = arith.constant 0 : i32
    return %c0_i32, %c0_i32_0 : i32, i32
  }
  func.func @transform_4(%arg0: i32) -> (i32, i32) {
    %c0_i32 = arith.constant 0 : i32
    %c0_i32_0 = arith.constant 0 : i32
    %c0_i32_1 = arith.constant 0 : i32
    return %c0_i32, %c0_i32_0 : i32, i32
  }
  func.func @transform_5(%arg0: i32) -> (i32, i32) {
    %c0_i32 = arith.constant 0 : i32
    %c0_i32_0 = arith.constant 0 : i32
    %c0_i32_1 = arith.constant 0 : i32
    return %c0_i32, %c0_i32_0 : i32, i32
  }
  func.func @transform_6(%arg0: i32) -> (i32, i32) {
    %c0_i32 = arith.constant 0 : i32
    %c0_i32_0 = arith.constant 0 : i32
    %c0_i32_1 = arith.constant 0 : i32
    return %c0_i32, %c0_i32_0 : i32, i32
  }
  func.func @transform_7(%arg0: i32) -> (i32, i32, i32) {
    %c0_i32 = arith.constant 0 : i32
    %c0_i32_0 = arith.constant 0 : i32
    %c0_i32_1 = arith.constant 0 : i32
    return %arg0, %c0_i32, %c0_i32_0 : i32, i32, i32
  }
}

</mosaic_0001>

<bundles_post_ra>
// kernel: trainable_feature_extractor_forward.1
= control target key start
LH: loop header
LB: loop body
LE: loop exit
PB: predicated region body
PF: predicated region fallthrough
CT: control target
= control target key end

     0   :  { %12 = vsyncpa [#allocation7], 0  ;;  %s7252_s0 = inlined_call_operand.vmem [shape: bf16[2,256,32], index: 0, kind: input, shape index: {}]   ;;  %s7253_s1 = inlined_call_operand.vmem [shape: bf16[32,64], index: 1, kind: input, shape index: {}]   ;;  %s7254_s2 = inlined_call_operand.vmem [shape: bf16[576,64], index: 2, kind: input, shape index: {}]   ;;  %s7255_s3 = inlined_call_operand.vmem [shape: bf16[576,64], index: 3, kind: input, shape index: {}]   ;;  %s7256_s4 = inlined_call_operand.vmem [shape: bf16[576,64], index: 4, kind: input, shape index: {}]   ;;  %s7257_s5 = inlined_call_operand.vmem [shape: f32[4,64], index: 5, kind: input, shape index: {}]   ;;  %s7258_s6 = inlined_call_operand.vmem [shape: f32[4,64], index: 6, kind: input, shape index: {}]   ;;  %s7259_s7 = inlined_call_operand.hbm [shape: f32[2,1,64], index: 7, kind: output, shape index: {}]  }
   0x1   :  { %14 = vsyncpa [#allocation7 + $0x1], 0  ;;  %s5717_s24 = smov 0   ;;  %s5719_s25 = smov 0  }
   0x2   :  { %s5721_s26 = smov 0   ;;  %s5723_s27 = smov 0  }
   0x3 LB: > { %s5738_s28 = sadd.s32 4294967295, %s5672_s27   ;;  %s4295_s29 = sadd.s32 4294967294, %s5672_s27   ;;  %s5672_s27 = sphi %s5723_s27, %s7265_s27   ;;  %s5668_s26 = sphi %s5721_s26, %s7264_s26   ;;  %s5664_s25 = sphi %s5719_s25, %s7263_s25   ;;  %s5660_s24 = sphi %s5717_s24, %s7262_s24  }
   0x4   : > { %s5742_s30 = sadd.s32 1, %s5672_s27   ;;  %s179_s8 = sadd.s32 1, %s5668_s26 }
   0x5   : > { %s176_s9 = ssub.s32 %s5672_s27, %s5742_s30  ;;  %p189_p0 = scmp.ne.s32.totalorder %s5668_s26, %s5664_s25 }
   0x6   : > { %p177_p1 = scmp.eq.s32.totalorder %s176_s9, 0  ;;  %p190_p2 = scmp.eq.s32.totalorder %s5738_s28, 1 }
   0x7   : > { %p195_p3 = scmp.ne.s32.totalorder %s5664_s25, %s5660_s24  ;;  %p196_p4 = scmp.eq.s32.totalorder %s4295_s29, 1 }
   0x8   : > { %s5753_s10 = scalar_select %p177_p1, %s5668_s26, %s179_s8  }
   0x9   : > { %p5755_p5 = por %p190_p2, %p189_p0  ;;  %p5759_p6 = por %p196_p4, %p195_p3 }
   0xa   : > { %p4298_p7 = scmp.ge.s32.totalorder %s5672_s27, 1  ;;  %p240_p8 = scmp.lt.s32.totalorder %s5672_s27, 3 }
   0xc   : > { %p241_p9 = pnand %p4298_p7, %p240_p8 }
   0xd   : > { %v5484_v0 = vld [vmem:[%s7253_s1] sm:$0xff] (!%p241_p9)   ;;  %p271_p10 = scmp.lt.s32.totalorder (!%p241_p9), %s5738_s28, 1  ;;  %v5485_v1 = vld [vmem:[%s7253_s1 + $0x8] sm:$0xff] (!%p241_p9)   ;;  %vm436_vm0 = vcmask (!%p241_p9), 261120   ;;  %vm277_vm1 = vcmask (!%p241_p9), 523264   ;;  %v5674_v18 = vmov (!%p241_p9), 0.0   ;;  %v784_v22 = vlaneseq (!%p241_p9) }
   0xe   : > { %244 = sbr.rel (%p241_p9) target bundleno = 1586 (0x632), region = 48  ;;  %4779 = vmatprep.subr.bf16.mxu0 (!%p241_p9), %v5484_v0  ;;  %5247 = vmatprep.subr.bf16.mxu1 (!%p241_p9), %v5484_v0  ;;  %282 = vst.msk [vmem:[#allocation3 + $0x20] sm:$0xff] (!%p241_p9), %vm277_vm1, %v5674_v18  ;;  %283 = vst.msk [vmem:[#allocation3 + $0x28] sm:$0xff] (!%p241_p9), %vm277_vm1, %v5674_v18  ;;  %v5502_v19 = vld [vmem:[%s7254_s2 + $0x60] sm:$0xff] (!%p241_p9)   ;;  %v5503_v20 = vld [vmem:[%s7254_s2 + $0x68] sm:$0xff] (!%p241_p9)   ;;  %vm2569_vm4 = vcmask (!%p241_p9), 519168  }
   0xf   : > { %4780 = vmatpush3.bf16.msra.mxu0 (!%p241_p9), %v5484_v0  ;;  %5249 = vmatpush3.bf16.msra.mxu1 (!%p241_p9), %v5484_v0  ;;  %278 = vst.msk [vmem:[#allocation3] sm:$0xff] (!%p241_p9), %vm277_vm1, %v5674_v18  ;;  %279 = vst.msk [vmem:[#allocation3 + $0x8] sm:$0xff] (!%p241_p9), %vm277_vm1, %v5674_v18  ;;  %v5504_v21 = vld [vmem:[%s7254_s2 + $0x70] sm:$0xff] (!%p241_p9)   ;;  %v5883_v25 = vshrl.u32 (!%p241_p9), %v784_v22, 7  ;;  %v5505_v28 = vld [vmem:[%s7254_s2 + $0x78] sm:$0xff] (!%p241_p9)   ;;  %vm5675_vm5 = vmmov (!%p241_p9), 0  }
  0x10   : > { %4781 = vmatprep.subr.bf16.mxu0 (!%p241_p9), %v5485_v1  ;;  %5248 = vmatprep.subr.bf16.mxu1 (!%p241_p9), %v5485_v1  ;;  %280 = vst.msk [vmem:[#allocation3 + $0x10] sm:$0xff] (!%p241_p9), %vm277_vm1, %v5674_v18  ;;  %281 = vst.msk [vmem:[#allocation3 + $0x18] sm:$0xff] (!%p241_p9), %vm277_vm1, %v5674_v18  ;;  %v5900_v30 = vld [vmem:[%s7254_s2] sm:$0xff] (!%p241_p9)   ;;  %vm3467_vm6 = vcmask (!%p241_p9), 517120   ;;  %s269_s16 = sand.u32 (!%p241_p9), 1, %s5664_s25   ;;  %vm4225_vm7 = vcmask (!%p241_p9), 516096  }
  0x11   : > { %284 = vst.msk [vmem:[#allocation3 + $0x30] sm:$0xff] (!%p241_p9), %vm277_vm1, %v5674_v18  ;;  %285 = vst.msk [vmem:[#allocation3 + $0x38] sm:$0xff] (!%p241_p9), %vm277_vm1, %v5674_v18  ;;  %vm1017_vm2 = vcmp.lt.s32.totalorder (!%p241_p9), %v5883_v25, 6  ;;  %v5906_v31 = vld [vmem:[%s7257_s5] ss:$0 sm:$0xff] (!%p241_p9)  ;;  %vm786_vm3 = vcmp.lt.s32.totalorder (!%p241_p9), %v5883_v25, 7 }
  0x12   : > { %286 = vst.msk [vmem:[#allocation3 + $0x40] sm:$0xff] (!%p241_p9), %vm277_vm1, %v5674_v18  ;;  %287 = vst.msk [vmem:[#allocation3 + $0x48] sm:$0xff] (!%p241_p9), %vm277_vm1, %v5674_v18  ;;  %v5911_v33 = vld [vmem:[%s7258_s6] ss:$0 sm:$0xff] (!%p241_p9)  ;;  %s4228_s23 = scalar_lea.sflag (!%p241_p9), [#allocation7], %s269_s16 }
  0x13   : > { %4782 = vmatpush3.bf16.msra.mxu0 (!%p241_p9), %v5485_v1  ;;  %5250 = vmatpush3.bf16.msra.mxu1 (!%p241_p9), %v5485_v1  ;;  %288 = vst.msk [vmem:[#allocation3 + $0x50] sm:$0xff] (!%p241_p9), %vm277_vm1, %v5674_v18  ;;  %289 = vst.msk [vmem:[#allocation3 + $0x58] sm:$0xff] (!%p241_p9), %vm277_vm1, %v5674_v18 }
  0x14   : > { %290 = vst.msk [vmem:[#allocation3 + $0x60] sm:$0xff] (!%p241_p9), %vm277_vm1, %v5674_v18  ;;  %291 = vst.msk [vmem:[#allocation3 + $0x68] sm:$0xff] (!%p241_p9), %vm277_vm1, %v5674_v18  ;;  %4815 = vmatprep.subr.bf16.mxu1 (!%p241_p9), %v5502_v19 }
  0x15   : > { %s272_s17 = scalar_select %p271_p10, %s5738_s28, 1  ;;  %292 = vst.msk [vmem:[#allocation3 + $0x70] sm:$0xff] %vm277_vm1, %v5674_v18  ;;  %293 = vst.msk [vmem:[#allocation3 + $0x78] sm:$0xff] %vm277_vm1, %v5674_v18 }
  0x16   : > { %294 = vst.msk [vmem:[#allocation3 + $0x80] sm:$0xff] %vm277_vm1, %v5674_v18  ;;  %295 = vst.msk [vmem:[#allocation3 + $0x88] sm:$0xff] %vm277_vm1, %v5674_v18  ;;  %v5879_v23 = vld [vmem:[#allocation3] sm:$0xff]  ;;  %v5881_v24 = vld [vmem:[#allocation3 + $0x8] sm:$0xff] }
  0x17   : > { %s4553_s18 = sshll.u32 %s272_s17, 7  ;;  %296 = vst.msk [vmem:[#allocation3 + $0x90] sm:$0xff] %vm277_vm1, %v5674_v18  ;;  %297 = vst.msk [vmem:[#allocation3 + $0x98] sm:$0xff] %vm277_vm1, %v5674_v18  ;;  %v997_v26 = vrot.slane %v5879_v23, 2  ;;  %v998_v27 = vrot.slane %v5881_v24, 2  ;;  %s4550_s17 = sshll.u32 %s5738_s28, 4 }
  0x18   : > { %s5776_s21 = scalar_lea.vmem %s7252_s0, %s4553_s18  ;;  %298 = vst.msk [vmem:[#allocation4] sm:$0xff] %vm277_vm1, %v5674_v18  ;;  %299 = vst.msk [vmem:[#allocation4 + $0x8] sm:$0xff] %vm277_vm1, %v5674_v18  ;;  %s270_s18 = scalar_lea.vmem [#allocation6], %s269_s16 }
  0x19   : > { %v5486_v2 = vld [vmem:[%s5776_s21] sm:$0xff]   ;;  %v5487_v3 = vld [vmem:[%s5776_s21 + $0x50] sm:$0xff]   ;;  %v5488_v4 = vld [vmem:[%s5776_s21 + $0x8] sm:$0xff]   ;;  %300 = vst.msk [vmem:[#allocation4 + $0x10] sm:$0xff] %vm277_vm1, %v5674_v18  ;;  %v5895_v29 = vsel %vm1017_vm2, %v997_v26, %v998_v27  ;;  %s4240_s19 = sshll.u32 %s270_s18, 4  ;;  %s7210_s22 = scalar_lea.hbm %s7259_s7, %s4550_s17  ;;  %s7212_s19 = int_to_ptr.vmem [resolvable:$true] %s4240_s19 }
  0x1a   : > { %4783 = vmatprep.mubr.msk.bf16.mxu0 %vm436_vm0, %v5486_v2  ;;  %4803 = vmatprep.mubr.msk.bf16.mxu1 %vm436_vm0, %v5487_v3  ;;  %v5489_v5 = vld [vmem:[%s5776_s21 + $0x58] sm:$0xff]   ;;  %v5490_v6 = vld [vmem:[%s5776_s21 + $0x10] sm:$0xff]   ;;  %v5491_v7 = vld [vmem:[%s5776_s21 + $0x60] sm:$0xff]   ;;  %301 = vst.msk [vmem:[#allocation4 + $0x18] sm:$0xff] %vm277_vm1, %v5674_v18  ;;  %s5610_s29 = scalar_lea.vmem %s7212_s19, 16  ;;  %s5676_s28 = smov [#allocation6]  }
  0x1b   : > { %4784 = vmatmul.mubr.msk.bf16.vlgmr.msra.gmra.mrb[0].mxu0 %vm436_vm0, %v5488_v4  ;;  %4804 = vmatmul.mubr.msk.bf16.vlgmr.msra.gmra.mrb[0].mxu1 %vm436_vm0, %v5489_v5  ;;  %v5492_v8 = vld [vmem:[%s5776_s21 + $0x18] sm:$0xff]   ;;  %v5493_v9 = vld [vmem:[%s5776_s21 + $0x68] sm:$0xff]   ;;  %v5494_v10 = vld [vmem:[%s5776_s21 + $0x20] sm:$0xff]   ;;  %302 = vst.msk [vmem:[#allocation4 + $0x20] sm:$0xff] %vm277_vm1, %v5674_v18  ;;  %p5611_p11 = scmp.ne.s32.totalorder %s7212_s19, %s5610_s29  ;;  %s5614_s8 = sshll.u32 %s5676_s28, 4  ;;  %s5615_s8 = int_to_ptr.vmem [resolvable:$false] %s5614_s8 }
  0x1c   : > { %4787 = vmatprep.mubr.msk.bf16.mxu0 %vm436_vm0, %v5490_v6  ;;  %4807 = vmatprep.mubr.msk.bf16.mxu1 %vm436_vm0, %v5491_v7  ;;  %v5495_v11 = vld [vmem:[%s5776_s21 + $0x70] sm:$0xff]   ;;  %v5496_v12 = vld [vmem:[%s5776_s21 + $0x28] sm:$0xff]   ;;  %v5497_v13 = vld [vmem:[%s5776_s21 + $0x78] sm:$0xff]   ;;  %303 = vst.msk [vmem:[#allocation4 + $0x28] sm:$0xff] %vm277_vm1, %v5674_v18  ;;  %s5616_s9 = scalar_lea.vmem %s5615_s8, 32  ;;  %p5617_p0 = scmp.lt.s32.totalorder %s7212_s19, %s5615_s8 }
  0x1d   : > { %v5498_v14 = vld [vmem:[%s5776_s21 + $0x30] sm:$0xff]   ;;  %v5499_v15 = vld [vmem:[%s5776_s21 + $0x38] sm:$0xff]   ;;  %v5500_v16 = vld [vmem:[%s5776_s21 + $0x40] sm:$0xff]   ;;  %304 = vst.msk [vmem:[#allocation5] sm:$0xff] %vm277_vm1, %v5674_v18  ;;  %4816 = vmatpush3.bf16.msra.mxu1 %v5502_v19  ;;  %p5612_p12 = pnand %p5611_p11, %p5755_p5  ;;  %p5618_p1 = scmp.lt.s32.totalorder %s5616_s9, %s5610_s29 }
  0x1e   : > { %v5501_v17 = vld [vmem:[%s5776_s21 + $0x48] sm:$0xff]   ;;  %305 = vst.msk [vmem:[#allocation5 + $0x8] sm:$0xff] %vm277_vm1, %v5674_v18  ;;  %306 = vst.msk [vmem:[#allocation5 + $0x10] sm:$0xff] %vm277_vm1, %v5674_v18  ;;  %4817 = vmatprep.subr.bf16.mxu1 %v5503_v20 }
  0x1f   : > { %307 = vst.msk [vmem:[#allocation5 + $0x18] sm:$0xff] %vm277_vm1, %v5674_v18  ;;  %p5613_p13 = pneg %p5612_p12  ;;  %p5619_p2 = por %p5618_p1, %p5617_p0 }
  0x21   : > { %4818 = vmatpush3.bf16.msra.mxu1 %v5503_v20  ;;  %p5620_p3 = pnand %p5619_p2, %p5613_p13 }
  0x22   : > { %4819 = vmatprep.subr.bf16.mxu1 %v5504_v21 }
  0x23   : > { %4788 = vmatmul.mubr.msk.bf16.gmra.mrb[4].mxu0 %vm436_vm0, %v5492_v8  ;;  %4808 = vmatmul.mubr.msk.bf16.gmra.mrb[4].mxu1 %vm436_vm0, %v5493_v9 }
  0x24   : > { %4791 = vmatprep.mubr.msk.bf16.mxu0 %vm436_vm0, %v5494_v10  ;;  %4811 = vmatprep.mubr.msk.bf16.mxu1 %vm436_vm0, %v5495_v11 }
  0x25   : > { %4820 = vmatpush3.bf16.msra.mxu1 %v5504_v21 }
  0x26   : > { %4821 = vmatprep.subr.bf16.mxu1 %v5505_v28 }
  0x29   : > { %4822 = vmatpush3.bf16.msra.mxu1 %v5505_v28 }
  0x2a   : > { %4839 = vmatprep.subr.bf16.mxu1 %v5900_v30 }
  0x2b   : > { %4792 = vmatmul.mubr.msk.bf16.gmra.mrb[8].mxu0 %vm436_vm0, %v5496_v12  ;;  %4812 = vmatmul.mubr.msk.bf16.gmra.mrb[8].mxu1 %vm436_vm0, %v5497_v13 }
  0x2c   : > { %4795 = vmatprep.mubr.msk.bf16.mxu0 %vm436_vm0, %v5498_v14 }
  0x33   : > { %4796 = vmatmul.mubr.msk.bf16.gmra.mrb[12].mxu0 %vm436_vm0, %v5499_v15 }
  0x34   : > { %4799 = vmatprep.mubr.msk.bf16.mxu0 %vm436_vm0, %v5500_v16 }
  0x3b   : > { %4800 = vmatmul.mubr.msk.bf16.gmra.mrb[16].mxu0 %vm436_vm0, %v5501_v17 }
  0xee   : > { %v4785_v32 = vpop.f32.mrb[0].mxu0  ;;  %v4805_v36 = vpop.f32.mrb[0].mxu1 }
  0xef   : > { %v653_v34 = vmul.f32 %v4785_v32, %v5906_v31  ;;  %v519_v35 = vpop.f32.mrb[1].mxu0  ;;  %v673_v39 = vmul.f32 %v4805_v36, %v5906_v31  ;;  %v599_v40 = vpop.f32.mrb[1].mxu1 }
  0xf0   : > { %v651_v37 = vmul.f32 %v5906_v31, %v519_v35  ;;  %v4786_v38 = vpop.f32.mrb[2].mxu0  ;;  %v671_v44 = vmul.f32 %v5906_v31, %v599_v40  ;;  %v4806_v45 = vpop.f32.mrb[2].mxu1 }
  0xf1   : > { %v690_v41 = vadd.f32 %v5911_v33, %v653_v34  ;;  %v654_v42 = vmul.f32 %v4786_v38, %v5906_v31  ;;  %v522_v43 = vpop.f32.mrb[3].mxu0  ;;  %v710_v48 = vadd.f32 %v5911_v33, %v673_v39  ;;  %v674_v49 = vmul.f32 %v4806_v45, %v5906_v31  ;;  %v602_v50 = vpop.f32.mrb[3].mxu1 }
  0xf2   : > { %v688_v46 = vadd.f32 %v5911_v33, %v651_v37  ;;  %v652_v47 = vmul.f32 %v5906_v31, %v522_v43  ;;  %v708_v53 = vadd.f32 %v5911_v33, %v671_v44  ;;  %v672_v54 = vmul.f32 %v5906_v31, %v602_v50 }
  0xf3   : > { %v722_v51 = vmax.f32 %v690_v41, 0.0  ;;  %v5925_v52 = vadd.f32 %v5911_v33, %v654_v42  ;;  %v742_v57 = vmax.f32 %v710_v48, 0.0  ;;  %v5931_v58 = vadd.f32 %v5911_v33, %v674_v49 }
  0xf4   : > { %v720_v55 = vmax.f32 %v688_v46, 0.0  ;;  %v689_v56 = vadd.f32 %v5911_v33, %v652_v47  ;;  %v740_v61 = vmax.f32 %v708_v53, 0.0  ;;  %v709_v62 = vadd.f32 %v5911_v33, %v672_v54 }
  0xf5   : > { %v754_v59 = vrot.slane %v722_v51, 1  ;;  %v723_v60 = vmax.f32 %v5925_v52, 0.0  ;;  %v774_v2 = vrot.slane %v742_v57, 1  ;;  %v743_v3 = vmax.f32 %v5931_v58, 0.0 }
  0xf6   : > { %v5935_v63 = vrot.slane %v720_v55, 1  ;;  %v721_v0 = vmax.f32 %v689_v56, 0.0  ;;  %v4789_v1 = vpop.f32.mrb[4].mxu0  ;;  %v5941_v7 = vrot.slane %v740_v61, 1  ;;  %v741_v8 = vmax.f32 %v709_v62, 0.0  ;;  %v4809_v9 = vpop.f32.mrb[4].mxu1 }
  0xf7   : > { %v755_v4 = vrot.slane %v723_v60, 1  ;;  %v657_v5 = vmul.f32 %v4789_v1, %v5906_v31  ;;  %v535_v6 = vpop.f32.mrb[5].mxu0  ;;  %v5946_v13 = vrot.slane %v743_v3, 1  ;;  %v677_v14 = vmul.f32 %v4809_v9, %v5906_v31  ;;  %v615_v15 = vpop.f32.mrb[5].mxu1 }
  0xf8   : > { %v753_v10 = vrot.slane %v721_v0, 1  ;;  %v655_v11 = vmul.f32 %v5906_v31, %v535_v6  ;;  %v4790_v12 = vpop.f32.mrb[6].mxu0  ;;  %v773_v21 = vrot.slane %v741_v8, 1  ;;  %v4810_v22 = vpop.f32.mrb[6].mxu1 }
  0xf9   : > { %v815_v16 = vsel %vm786_vm3, %v754_v59, %v755_v4  ;;  %v694_v17 = vadd.f32 %v5911_v33, %v657_v5  ;;  %v658_v19 = vmul.f32 %v4790_v12, %v5906_v31  ;;  %v538_v20 = vpop.f32.mrb[7].mxu0  ;;  %v618_v35 = vpop.f32.mrb[7].mxu1  ;;  %v795_v41 = vsel %vm786_vm3, %v774_v2, %v5946_v13 }
  0xfa   : > { %v5953_v26 = vmax.f32 %v722_v51, %v815_v16  ;;  %v816_v28 = vsel %vm786_vm3, %v753_v10, %v754_v59  ;;  %v817_v32 = vsel %vm786_vm3, %v5935_v63, %v753_v10  ;;  %v692_v34 = vadd.f32 %v5911_v33, %v655_v11 }
  0xfb   : > { %v819_v36 = vmax.f32 %v720_v55, %v817_v32  ;;  %v820_v37 = vmax.f32 %v721_v0, %v816_v28  ;;  %v726_v38 = vmax.f32 %v694_v17, 0.0  ;;  %v5962_v39 = vadd.f32 %v5911_v33, %v658_v19 }
  0xfc   : > { %v724_v40 = vmax.f32 %v692_v34, 0.0  ;;  %v656_v42 = vmul.f32 %v5906_v31, %v538_v20  ;;  %v796_v43 = vsel %vm786_vm3, %v773_v21, %v774_v2  ;;  %v841_v47 = vmax.f32 %v742_v57, %v795_v41 }
  0xfd   : > { %v851_v44 = vmax.f32 %v819_v36, %v5953_v26  ;;  %v758_v45 = vrot.slane %v726_v38, 1  ;;  %v727_v46 = vmax.f32 %v5962_v39, 0.0  ;;  %v797_v50 = vsel %vm786_vm3, %v5941_v7, %v773_v21 }
  0xfe   : > { %v756_v48 = vrot.slane %v724_v40, 1  ;;  %v693_v49 = vadd.f32 %v5911_v33, %v656_v42  ;;  %v5976_v51 = vmax.f32 %v741_v8, %v796_v43  ;;  %v4793_v53 = vpop.f32.mrb[8].mxu0  ;;  %v839_v55 = vmax.f32 %v740_v61, %v797_v50  ;;  %v4813_v59 = vpop.f32.mrb[8].mxu1 }
  0xff   : > { %883 = vst.msk [vmem:[#allocation2] sm:$0xff] %vm277_vm1, %v851_v44  ;;  %v5981_v54 = vrot.slane %v727_v46, 1  ;;  %v714_v56 = vadd.f32 %v5911_v33, %v677_v14  ;;  %v675_v57 = vmul.f32 %v5906_v31, %v615_v15  ;;  %v551_v62 = vpop.f32.mrb[9].mxu0  ;;  %v678_v2 = vmul.f32 %v4810_v22, %v5906_v31  ;;  %v631_v6 = vpop.f32.mrb[9].mxu1 }
 0x100   : > { %v814_v0 = vsel %vm786_vm3, %v755_v4, %v756_v48  ;;  %v725_v1 = vmax.f32 %v693_v49, 0.0  ;;  %v676_v5 = vmul.f32 %v5906_v31, %v618_v35  ;;  %v4794_v8 = vpop.f32.mrb[10].mxu0  ;;  %v871_v10 = vmax.f32 %v839_v55, %v841_v47  ;;  %v4814_v12 = vpop.f32.mrb[10].mxu1 }
 0x101   : > { %v811_v61 = vsel %vm786_vm3, %v758_v45, %v5981_v54  ;;  %v822_v9 = vmax.f32 %v723_v60, %v814_v0  ;;  %v746_v11 = vmax.f32 %v714_v56, 0.0  ;;  %v554_v14 = vpop.f32.mrb[11].mxu0  ;;  %v712_v16 = vadd.f32 %v5911_v33, %v675_v57  ;;  %v634_v19 = vpop.f32.mrb[11].mxu1 }
 0x102   : > { %v825_v15 = vmax.f32 %v726_v38, %v811_v61  ;;  %v757_v4 = vrot.slane %v725_v1, 1  ;;  %v5996_v17 = vadd.f32 %v5911_v33, %v678_v2  ;;  %903 = vst.msk [vmem:[#allocation2 + $0xa0] sm:$0xff] %vm277_vm1, %v871_v10  ;;  %v713_v22 = vadd.f32 %v5911_v33, %v676_v5 }
 0x103   : > { %v852_v20 = vmax.f32 %v820_v37, %v822_v9  ;;  %v778_v21 = vrot.slane %v746_v11, 1  ;;  %v661_v52 = vmul.f32 %v4793_v53, %v5906_v31  ;;  %v744_v32 = vmax.f32 %v712_v16, 0.0 }
 0x104   : > { %v812_v60 = vsel %vm786_vm3, %v757_v4, %v758_v45  ;;  %v813_v28 = vsel %vm786_vm3, %v756_v48, %v757_v4  ;;  %v747_v34 = vmax.f32 %v5996_v17, 0.0  ;;  %v745_v37 = vmax.f32 %v713_v22, 0.0 }
 0x105   : > { %v823_v35 = vmax.f32 %v724_v40, %v813_v28  ;;  %v6006_v36 = vmax.f32 %v725_v1, %v812_v60  ;;  %884 = vst.msk [vmem:[#allocation2 + $0x8] sm:$0xff] %vm277_vm1, %v852_v20  ;;  %v6010_v38 = vadd.f32 %v5911_v33, %v661_v52  ;;  %v776_v41 = vrot.slane %v744_v32, 1 }
 0x106   : > { %v6014_v42 = vrot.slane %v747_v34, 1  ;;  %v681_v43 = vmul.f32 %v4813_v59, %v5906_v31  ;;  %v659_v44 = vmul.f32 %v5906_v31, %v551_v62  ;;  %v4797_v45 = vpop.f32.mrb[12].mxu0  ;;  %v777_v48 = vrot.slane %v745_v37, 1 }
 0x107   : > { %v853_v40 = vmax.f32 %v5953_v26, %v823_v35  ;;  %v855_v47 = vmax.f32 %v823_v35, %v825_v15  ;;  %v567_v49 = vpop.f32.mrb[13].mxu0  ;;  %v794_v50 = vsel %vm786_vm3, %v5946_v13, %v776_v41  ;;  %v730_v55 = vmax.f32 %v6010_v38, 0.0 }
 0x108   : > { %v791_v53 = vsel %vm786_vm3, %v778_v21, %v6014_v42  ;;  %v6027_v56 = vadd.f32 %v5911_v33, %v681_v43  ;;  %v6029_v57 = vpop.f32.mrb[14].mxu0  ;;  %v792_v59 = vsel %vm786_vm3, %v777_v48, %v778_v21  ;;  %v793_v13 = vsel %vm786_vm3, %v776_v41, %v777_v48 }
 0x109   : > { %885 = vst.msk [vmem:[#allocation2 + $0x10] sm:$0xff] %vm277_vm1, %v853_v40  ;;  %887 = vst.msk [vmem:[#allocation2 + $0x20] sm:$0xff] %vm277_vm1, %v855_v47  ;;  %v845_v26 = vmax.f32 %v746_v11, %v791_v53  ;;  %v842_v62 = vmax.f32 %v743_v3, %v794_v50  ;;  %v6039_v0 = vpop.f32.mrb[15].mxu0  ;;  %v843_v1 = vmax.f32 %v744_v32, %v793_v13  ;;  %v762_v5 = vrot.slane %v730_v55, 1 }
 0x10a   : > { %v6041_v2 = vmax.f32 %v745_v37, %v792_v59  ;;  %v750_v61 = vmax.f32 %v6027_v56, 0.0  ;;  %v696_v10 = vadd.f32 %v5911_v33, %v659_v44  ;;  %v679_v11 = vmul.f32 %v5906_v31, %v631_v6 }
 0x10b   : > { %v872_v9 = vmax.f32 %v5976_v51, %v842_v62  ;;  %v662_v15 = vmul.f32 %v4794_v8, %v5906_v31  ;;  %v875_v16 = vmax.f32 %v843_v1, %v845_v26  ;;  %v682_v22 = vmul.f32 %v4814_v12, %v5906_v31 }
 0x10c   : > { %v915_v4 = vld [vmem:[#allocation2] ss:$2 sm:$0xff]  ;;  %v782_v58 = vrot.slane %v750_v61, 1  ;;  %v728_v3 = vmax.f32 %v696_v10, 0.0  ;;  %v716_v20 = vadd.f32 %v5911_v33, %v679_v11  ;;  %v660_v51 = vmul.f32 %v5906_v31, %v554_v14 }
 0x10d   : > { %904 = vst.msk [vmem:[#allocation2 + $0xa8] sm:$0xff] %vm277_vm1, %v872_v9  ;;  %v6051_v21 = vadd.f32 %v5911_v33, %v662_v15  ;;  %916 = vst.msk [vmem:[#allocation3 + $0x11] sm:$0xff] %vm277_vm1, %v915_v4  ;;  %v680_v6 = vmul.f32 %v5906_v31, %v634_v19  ;;  %v665_v8 = vmul.f32 %v4797_v45, %v5906_v31 }
 0x10e   : > { %907 = vst.msk [vmem:[#allocation2 + $0xc0] sm:$0xff] %vm277_vm1, %v875_v16  ;;  %v663_v52 = vmul.f32 %v5906_v31, %v567_v49  ;;  %v4801_v60 = vpop.f32.mrb[16].mxu0  ;;  %v760_v28 = vrot.slane %v728_v3, 1  ;;  %v748_v32 = vmax.f32 %v716_v20, 0.0  ;;  %v719_v37 = vadd.f32 %v5911_v33, %v682_v22 }
 0x10f   : > { %v731_v35 = vmax.f32 %v6051_v21, 0.0  ;;  %v583_v12 = vpop.f32.mrb[17].mxu0  ;;  %v697_v38 = vadd.f32 %v5911_v33, %v660_v51  ;;  %v717_v41 = vadd.f32 %v5911_v33, %v680_v6  ;;  %v6065_v14 = vadd.f32 %v5911_v33, %v665_v8 }
 0x110   : > { %v6068_v19 = vadd.f32 %v5911_v33, %v663_v52  ;;  %v4802_v43 = vpop.f32.mrb[18].mxu0  ;;  %v810_v44 = vsel %vm786_vm3, %v5981_v54, %v760_v28  ;;  %v780_v45 = vrot.slane %v748_v32, 1  ;;  %v751_v47 = vmax.f32 %v719_v37, 0.0 }
 0x111   : > { %v763_v40 = vrot.slane %v731_v35, 1  ;;  %v586_v48 = vpop.f32.mrb[19].mxu0  ;;  %v729_v49 = vmax.f32 %v697_v38, 0.0  ;;  %v826_v50 = vmax.f32 %v727_v46, %v810_v44  ;;  %v749_v53 = vmax.f32 %v717_v41, 0.0 }
 0x112   : > { %v734_v56 = vmax.f32 %v6065_v14, 0.0  ;;  %v790_v26 = vsel %vm786_vm3, %v6014_v42, %v780_v45  ;;  %v783_v59 = vrot.slane %v751_v47, 1  ;;  %v732_v13 = vmax.f32 %v6068_v19, 0.0 }
 0x113   : > { %v807_v54 = vsel %vm786_vm3, %v762_v5, %v763_v40  ;;  %v761_v9 = vrot.slane %v729_v49, 1  ;;  %v856_v10 = vmax.f32 %v6006_v36, %v826_v50  ;;  %v781_v39 = vrot.slane %v749_v53, 1 }
 0x114   : > { %v930_v62 = vld [vmem:[#allocation2 + $0xa0] ss:$2 sm:$0xff]  ;;  %v829_v1 = vmax.f32 %v730_v55, %v807_v54  ;;  %v787_v46 = vsel %vm786_vm3, %v782_v58, %v783_v59  ;;  %v818_v11 = vsel %vm786_vm3, %v783_v59, %v5935_v63  ;;  %v846_v42 = vmax.f32 %v747_v34, %v790_v26  ;;  %v6105_v8 = vld [vmem:[#allocation3 + $0x10] sm:$0xff]  ;;  %v6121_v41 = vld [vmem:[#allocation3 + $0x18] sm:$0xff] }
 0x115   : > { %931 = vst.msk [vmem:[#allocation3 + $0x61] sm:$0xff] %vm277_vm1, %v930_v62  ;;  %v766_v15 = vrot.slane %v734_v56, 1  ;;  %v849_v55 = vmax.f32 %v750_v61, %v787_v46  ;;  %v850_v4 = vmax.f32 %v751_v47, %v818_v11  ;;  %v808_v36 = vsel %vm786_vm3, %v761_v9, %v762_v5  ;;  %888 = vst.msk [vmem:[#allocation2 + $0x28] sm:$0xff] %vm277_vm1, %v856_v10 }
 0x116   : > { %v809_v16 = vsel %vm786_vm3, %v760_v28, %v761_v9  ;;  %v828_v63 = vmax.f32 %v729_v49, %v808_v36  ;;  %v788_v17 = vsel %vm786_vm3, %v781_v39, %v782_v58  ;;  %v789_v34 = vsel %vm786_vm3, %v780_v45, %v781_v39 }
 0x117   : > { %v827_v20 = vmax.f32 %v728_v3, %v809_v16  ;;  %v847_v22 = vmax.f32 %v748_v32, %v789_v34  ;;  %v848_v51 = vmax.f32 %v749_v53, %v788_v17  ;;  %v876_v6 = vmax.f32 %v6041_v2, %v846_v42 }
 0x118   : > { %v764_v3 = vrot.slane %v732_v13, 1  ;;  %v666_v58 = vmul.f32 %v6029_v57, %v5906_v31  ;;  %v664_v28 = vmul.f32 %v5906_v31, %v6039_v0  ;;  %v669_v32 = vmul.f32 %v4801_v60, %v5906_v31 }
 0x119   : > { %v859_v61 = vmax.f32 %v827_v20, %v829_v1  ;;  %v879_v5 = vmax.f32 %v847_v22, %v849_v55  ;;  %v880_v52 = vmax.f32 %v848_v51, %v850_v4  ;;  %908 = vst.msk [vmem:[#allocation2 + $0xc8] sm:$0xff] %vm277_vm1, %v876_v6  ;;  %v667_v2 = vmul.f32 %v5906_v31, %v583_v12 }
 0x11a   : > { %v670_v37 = vmul.f32 %v4802_v43, %v5906_v31  ;;  %v668_v38 = vmul.f32 %v5906_v31, %v586_v48  ;;  %v960_v44 = vrot.slane %v6105_v8, 1  ;;  %v806_v0 = vsel %vm786_vm3, %v763_v40, %v764_v3 }
 0x11b   : > { %891 = vst.msk [vmem:[#allocation2 + $0x40] sm:$0xff] %vm277_vm1, %v859_v61  ;;  %911 = vst.msk [vmem:[#allocation2 + $0xe0] sm:$0xff] %vm277_vm1, %v879_v5  ;;  %v703_v60 = vadd.f32 %v5911_v33, %v666_v58  ;;  %v701_v45 = vadd.f32 %v5911_v33, %v664_v28  ;;  %v706_v47 = vadd.f32 %v5911_v33, %v669_v32  ;;  %v961_v53 = vrot.slane %v6121_v41, 1  ;;  %v6181_v32 = vld [vmem:[#allocation3 + $0x90] sm:$0xff] }
 0x11c   : > { %912 = vst.msk [vmem:[#allocation2 + $0xe8] sm:$0xff] %vm277_vm1, %v880_v52  ;;  %v918_v57 = vld [vmem:[#allocation2 + $0x20] ss:$2 sm:$0xff]  ;;  %v830_v12 = vmax.f32 %v731_v35, %v806_v0  ;;  %v704_v31 = vadd.f32 %v5911_v33, %v667_v2  ;;  %v707_v43 = vadd.f32 %v5911_v33, %v670_v37  ;;  %v705_v48 = vadd.f32 %v5911_v33, %v668_v38 }
 0x11d   : > { %919 = vst.msk [vmem:[#allocation3 + $0x21] sm:$0xff] %vm277_vm1, %v918_v57  ;;  %v735_v49 = vmax.f32 %v703_v60, 0.0  ;;  %v733_v50 = vmax.f32 %v701_v45, 0.0  ;;  %v738_v40 = vmax.f32 %v706_v47, 0.0  ;;  %v6140_v21 = vsel %vm786_vm3, %v960_v44, %v961_v53  ;;  %v6183_v38 = vld [vmem:[#allocation3 + $0x60] sm:$0xff]  ;;  %v6185_v57 = vld [vmem:[#allocation3 + $0x68] sm:$0xff] }
 0x11e   : > { %v860_v26 = vmax.f32 %v828_v63, %v830_v12  ;;  %v736_v54 = vmax.f32 %v704_v31, 0.0  ;;  %v739_v59 = vmax.f32 %v707_v43, 0.0  ;;  %v737_v62 = vmax.f32 %v705_v48, 0.0 }
 0x11f   : > { %v767_v1 = vrot.slane %v735_v49, 1  ;;  %v765_v9 = vrot.slane %v733_v50, 1  ;;  %v770_v10 = vrot.slane %v738_v40, 1  ;;  %v999_v11 = vrot.slane %v6105_v8, 2 }
 0x120   : > { %v933_v35 = vld [vmem:[#allocation2 + $0xc0] ss:$2 sm:$0xff]  ;;  %892 = vst.msk [vmem:[#allocation2 + $0x48] sm:$0xff] %vm277_vm1, %v860_v26  ;;  %v768_v33 = vrot.slane %v736_v54, 1  ;;  %v771_v39 = vrot.slane %v739_v59, 1  ;;  %v769_v46 = vrot.slane %v737_v62, 1  ;;  %v6199_v31 = vpack.c.bf16 %v6121_v41, %v6105_v8 }
 0x121   : > { %934 = vst.msk [vmem:[#allocation3 + $0x71] sm:$0xff] %vm277_vm1, %v933_v35  ;;  %v803_v55 = vsel %vm786_vm3, %v766_v15, %v767_v1  ;;  %v804_v4 = vsel %vm786_vm3, %v765_v9, %v766_v15  ;;  %v805_v36 = vsel %vm786_vm3, %v764_v3, %v765_v9  ;;  %v1000_v16 = vrot.slane %v6121_v41, 2  ;;  %v5521_v8 = vld [vmem:[%s7254_s2 + $0x98] sm:$0xff]  }
 0x122   : > { %v833_v20 = vmax.f32 %v734_v56, %v803_v55  ;;  %v831_v63 = vmax.f32 %v732_v13, %v805_v36  ;;  %v832_v17 = vmax.f32 %v733_v50, %v804_v4  ;;  %v802_v34 = vsel %vm786_vm3, %v767_v1, %v768_v33  ;;  %4823 = vmatprep.mubr.msk.bf16.mxu1 %vm277_vm1, %v6199_v31 }
 0x123   : > { %v936_v42 = vld [vmem:[#allocation2 + $0xe0] ss:$2 sm:$0xff]  ;;  %v798_v15 = vsel %vm786_vm3, %v771_v39, %v5941_v7  ;;  %v799_v22 = vsel %vm786_vm3, %v770_v10, %v771_v39  ;;  %v800_v51 = vsel %vm786_vm3, %v769_v46, %v770_v10  ;;  %v801_v14 = vsel %vm786_vm3, %v768_v33, %v769_v46  ;;  %v5508_v33 = vld [vmem:[%s7254_s2 + $0x10] sm:$0xff]  }
 0x124   : > { %937 = vst.msk [vmem:[#allocation3 + $0x81] sm:$0xff] %vm277_vm1, %v936_v42  ;;  %v6168_v56 = vld [vmem:[#allocation3 + $0x20] sm:$0xff]  ;;  %v863_v19 = vmax.f32 %v831_v63, %v833_v20  ;;  %v837_v13 = vmax.f32 %v738_v40, %v799_v22  ;;  %v838_v61 = vmax.f32 %v739_v59, %v798_v15  ;;  %v834_v6 = vmax.f32 %v735_v49, %v802_v34  ;;  %v6179_v28 = vld [vmem:[#allocation3 + $0x28] sm:$0xff] }
 0x125   : > { %v835_v5 = vmax.f32 %v736_v54, %v801_v14  ;;  %v836_v52 = vmax.f32 %v737_v62, %v800_v51  ;;  %v962_v7 = vrot.slane %v6168_v56, 1  ;;  %v1001_v3 = vrot.slane %v6168_v56, 2  ;;  %v5507_v49 = vld [vmem:[%s7254_s2 + $0x8] sm:$0xff]  }
 0x126   : > { %895 = vst.msk [vmem:[#allocation2 + $0x60] sm:$0xff] %vm277_vm1, %v863_v19  ;;  %v6177_v58 = vsel %vm1017_vm2, %v999_v11, %v1000_v16  ;;  %v864_v37 = vmax.f32 %v832_v17, %v834_v6  ;;  %v6203_v43 = vpack.c.bf16 %v6179_v28, %v6168_v56  ;;  %v970_v50 = vrot.slane %v6183_v38, 1 }
 0x127   : > { %v921_v2 = vld [vmem:[#allocation2 + $0x40] ss:$2 sm:$0xff]  ;;  %v867_v0 = vmax.f32 %v835_v5, %v837_v13  ;;  %v868_v60 = vmax.f32 %v836_v52, %v838_v61  ;;  %v993_v45 = vsel %vm786_vm3, %v961_v53, %v962_v7  ;;  %v1033_v47 = vsel %vm1017_vm2, %v1000_v16, %v1001_v3 }
 0x128   : > { %922 = vst.msk [vmem:[#allocation3 + $0x31] sm:$0xff] %vm277_vm1, %v921_v2  ;;  %v6194_v12 = vld [vmem:[#allocation3 + $0x78] sm:$0xff]  ;;  %896 = vst.msk [vmem:[#allocation2 + $0x68] sm:$0xff] %vm277_vm1, %v864_v37  ;;  %v971_v40 = vrot.slane %v6185_v57, 1  ;;  %v6214_v41 = vld [vmem:[#allocation3 + $0x70] sm:$0xff]  ;;  %v976_v53 = vrot.slane %v6181_v32, 1  ;;  %4824 = vmatmul.mubr.msk.bf16.vlgmr.msra.gmra.mrb[12].mxu1 %vm277_vm1, %v6203_v43  ;;  %v6229_v9 = vpack.c.bf16 %v993_v45, %v6140_v21  ;;  %v6264_v20 = vsel %vm1017_vm2, %v998_v27, %v999_v11 }
 0x129   : > { %899 = vst.msk [vmem:[#allocation2 + $0x80] sm:$0xff] %vm277_vm1, %v867_v0  ;;  %900 = vst.msk [vmem:[#allocation2 + $0x88] sm:$0xff] %vm277_vm1, %v868_v60  ;;  %v973_v26 = vrot.slane %v6194_v12, 1  ;;  %v1015_v62 = vrot.slane %v6181_v32, 2  ;;  %4840 = vmatpush3.bf16.msra.mxu1 %v5900_v30  ;;  %v1009_v1 = vrot.slane %v6183_v38, 2  ;;  %v963_v10 = vrot.slane %v6179_v28, 1 }
 0x12a   : > { %v972_v35 = vrot.slane %v6214_v41, 1  ;;  %4841 = vmatprep.subr.bf16.mxu1 %v5507_v49  ;;  %v1010_v39 = vrot.slane %v6185_v57, 2  ;;  %v984_v30 = vsel %vm786_vm3, %v970_v50, %v971_v40  ;;  %v1012_v19 = vrot.slane %v6194_v12, 2  ;;  %v5509_v11 = vld [vmem:[%s7254_s2 + $0x18] sm:$0xff]  }
 0x12b   : > { %v6205_v48 = vld [vmem:[#allocation3 + $0x88] sm:$0xff]  ;;  %v6220_v54 = vld [vmem:[#allocation3 + $0x80] sm:$0xff]  ;;  %v992_v4 = vsel %vm786_vm3, %v962_v7, %v963_v10  ;;  %v1961_v0 = vpack.c.bf16 %v6264_v20, %v5895_v29  ;;  %v6302_v60 = vpack.c.bf16 %v1033_v47, %v6177_v58  ;;  %v1002_v45 = vrot.slane %v6179_v28, 2  ;;  %v5533_v29 = vld [vmem:[%s7254_s2 + $0xb8] sm:$0xff]  }
 0x12c   : > { %v975_v59 = vrot.slane %v6205_v48, 1  ;;  %v974_v46 = vrot.slane %v6220_v54, 1  ;;  %v983_v36 = vsel %vm786_vm3, %v971_v40, %v972_v35  ;;  %v6256_v16 = vsel %vm786_vm3, %v972_v35, %v973_v26  ;;  %v5510_v58 = vld [vmem:[%s7254_s2 + $0xc0] sm:$0xff]  }
 0x12d   : > { %4842 = vmatpush3.bf16.msra.mxu1 %v5507_v49  ;;  %v6273_v13 = vpack.c.bf16 %v983_v36, %v984_v30  ;;  %v1014_v7 = vrot.slane %v6205_v48, 2  ;;  %v1011_v40 = vrot.slane %v6214_v41, 2  ;;  %v1032_v47 = vsel %vm1017_vm2, %v1001_v3, %v1002_v45 }
 0x12e   : > { %v6246_v21 = vsel %vm786_vm3, %v975_v59, %v976_v53  ;;  %v981_v27 = vsel %vm786_vm3, %v973_v26, %v974_v46  ;;  %4843 = vmatprep.subr.bf16.mxu1 %v5508_v33  ;;  %v6290_v52 = vsel %vm786_vm3, %v974_v46, %v975_v59  ;;  %v1024_v26 = vsel %vm1017_vm2, %v1009_v1, %v1010_v39 }
 0x12f   : > { %v944_v42 = vld [vmem:[#allocation3 + $0x30] sm:$0xff]  ;;  %v6248_v55 = vld [vmem:[#allocation3 + $0x38] sm:$0xff]  ;;  %v924_v63 = vld [vmem:[#allocation2 + $0x60] ss:$2 sm:$0xff]  ;;  %v6286_v5 = vpack.c.bf16 %v981_v27, %v6256_v16  ;;  %v1810_v37 = vpack.c.bf16 %v6246_v21, %v6290_v52  ;;  %v1013_v59 = vrot.slane %v6220_v54, 2  ;;  %v6328_v35 = vsel %vm1017_vm2, %v1011_v40, %v1012_v19 }
 0x130   : > { %v964_v17 = vrot.slane %v944_v42, 1  ;;  %v965_v34 = vrot.slane %v6248_v55, 1  ;;  %v1003_v15 = vrot.slane %v944_v42, 2  ;;  %v1004_v22 = vrot.slane %v6248_v55, 2  ;;  %v927_v51 = vld [vmem:[#allocation2 + $0x80] ss:$2 sm:$0xff] }
 0x131   : > { %925 = vst.msk [vmem:[#allocation3 + $0x41] sm:$0xff] %vm277_vm1, %v924_v63  ;;  %v6270_v14 = vpack.c.bf16 %v6248_v55, %v944_v42  ;;  %928 = vst.msk [vmem:[#allocation3 + $0x51] sm:$0xff] %vm277_vm1, %v927_v51  ;;  %4844 = vmatpush3.bf16.msra.mxu1 %v5508_v33  ;;  %v1021_v46 = vsel %vm1017_vm2, %v1012_v19, %v1013_v59  ;;  %v6341_v3 = vsel %vm1017_vm2, %v1013_v59, %v1014_v7  ;;  %v5534_v21 = vld [vmem:[%s7254_s2 + $0x100] sm:$0xff]  }
 0x132   : > { %v991_v61 = vsel %vm786_vm3, %v963_v10, %v964_v17  ;;  %v990_v6 = vsel %vm786_vm3, %v964_v17, %v965_v34  ;;  %v1030_v49 = vsel %vm1017_vm2, %v1003_v15, %v1004_v22  ;;  %4845 = vmatprep.subr.bf16.mxu1 %v5509_v11  ;;  %v1031_v28 = vsel %vm1017_vm2, %v1002_v45, %v1003_v15 }
 0x133   : > { %4827 = vmatprep.mubr.msk.bf16.mxu1 %vm277_vm1, %v6270_v14  ;;  %v6295_v2 = vpack.c.bf16 %v991_v61, %v992_v4  ;;  %v1023_v10 = vsel %vm1017_vm2, %v1010_v39, %v1011_v40  ;;  %v6330_v33 = vpack.c.bf16 %v1031_v28, %v1032_v47  ;;  %v6337_v56 = vpack.c.bf16 %v1021_v46, %v6328_v35 }
 0x134   : > { %v6332_v30 = vpack.c.bf16 %v1023_v10, %v1024_v26  ;;  %v6347_v39 = vsel %vm1017_vm2, %v1014_v7, %v1015_v62  ;;  %v1968_v20 = vpack.c.bf16 %v6328_v35, %v6328_v35 }
 0x135   : > { %4846 = vmatpush3.bf16.msra.mxu1 %v5509_v11 }
 0x136   : > { %4863 = vmatprep.subr.bf16.mxu1 %v5510_v58 }
 0x138   : > { %v946_v42 = vld [vmem:[#allocation3 + $0x40] sm:$0xff]  ;;  %v947_v4 = vld [vmem:[#allocation3 + $0x48] sm:$0xff]  ;;  %v948_v51 = vld [vmem:[#allocation3 + $0x50] sm:$0xff] }
 0x139   : > { %v966_v36 = vrot.slane %v946_v42, 1  ;;  %v967_v63 = vrot.slane %v947_v4, 1  ;;  %v1005_v17 = vrot.slane %v946_v42, 2  ;;  %v1006_v15 = vrot.slane %v947_v4, 2  ;;  %v949_v19 = vld [vmem:[#allocation3 + $0x58] sm:$0xff] }
 0x13a   : > { %v1041_v27 = vpack.c.bf16 %v947_v4, %v946_v42  ;;  %v968_v61 = vrot.slane %v948_v51, 1  ;;  %v969_v45 = vrot.slane %v949_v19, 1  ;;  %v1007_v40 = vrot.slane %v948_v51, 2 }
 0x13b   : > { %v1008_v26 = vrot.slane %v949_v19, 2  ;;  %v1042_v59 = vpack.c.bf16 %v949_v19, %v948_v51  ;;  %v989_v28 = vsel %vm786_vm3, %v965_v34, %v966_v36  ;;  %v988_v7 = vsel %vm786_vm3, %v966_v36, %v967_v63 }
 0x13c   : > { %4828 = vmatmul.mubr.msk.bf16.gmra.mrb[16].mxu1 %vm277_vm1, %v1041_v27  ;;  %v6354_v47 = vpack.c.bf16 %v989_v28, %v990_v6  ;;  %v987_v11 = vsel %vm786_vm3, %v967_v63, %v968_v61  ;;  %v985_v10 = vsel %vm786_vm3, %v969_v45, %v970_v50  ;;  %v986_v46 = vsel %vm786_vm3, %v968_v61, %v969_v45  ;;  %v5515_v61 = vld [vmem:[%s7254_s2 + $0x28] sm:$0xff]  }
 0x13d   : > { %4831 = vmatprep.mubr.msk.bf16.mxu1 %vm277_vm1, %v1042_v59  ;;  %v6365_v34 = vpack.c.bf16 %v987_v11, %v988_v7  ;;  %v6367_v42 = vpack.c.bf16 %v985_v10, %v986_v46  ;;  %v1029_v6 = vsel %vm1017_vm2, %v1004_v22, %v1005_v17  ;;  %v1027_v4 = vsel %vm1017_vm2, %v1006_v15, %v1007_v40  ;;  %v5523_v7 = vld [vmem:[%s7254_s2 + $0xe8] sm:$0xff]   ;;  %v5526_v11 = vld [vmem:[%s7254_s2 + $0x40] sm:$0xff]  }
 0x13e   : > { %v6375_v36 = vpack.c.bf16 %v1029_v6, %v1030_v49  ;;  %v1028_v50 = vsel %vm1017_vm2, %v1005_v17, %v1006_v15  ;;  %v1025_v63 = vsel %vm1017_vm2, %v1008_v26, %v1009_v1  ;;  %v1026_v51 = vsel %vm1017_vm2, %v1007_v40, %v1008_v26  ;;  %v5527_v46 = vld [vmem:[%s7254_s2 + $0x48] sm:$0xff]   ;;  %v5528_v6 = vld [vmem:[%s7254_s2 + $0x50] sm:$0xff]  }
 0x13f   : > { %v6385_v55 = vpack.c.bf16 %v1027_v4, %v1028_v50  ;;  %v6387_v19 = vpack.c.bf16 %v1025_v63, %v1026_v51  ;;  %v2287_v22 = vpack.c.bf16 %v6347_v39, %v6341_v3  ;;  %v1043_v49 = vpack.c.bf16 %v6185_v57, %v6183_v38  ;;  %v5511_v38 = vld [vmem:[%s7254_s2 + $0xc8] sm:$0xff]   ;;  %v5512_v57 = vld [vmem:[%s7254_s2 + $0xd0] sm:$0xff]   ;;  %v6650_v39 = vld [vmem:[%s7257_s5 + $0x1] ss:$0 sm:$0xff] }
 0x140   : > { %v1053_v17 = vpack.c.bf16 %v6194_v12, %v6214_v41  ;;  %v1037_v1 = vpack.c.bf16 %v5881_v24, %v5879_v23  ;;  %v1054_v15 = vpack.c.bf16 %v6220_v54, %v6220_v54  ;;  %v5513_v12 = vld [vmem:[%s7254_s2 + $0xd8] sm:$0xff]   ;;  %v958_v45 = vrot.slane %v5879_v23, 1  ;;  %v5519_v23 = vld [vmem:[%s7254_s2 + $0x88] sm:$0xff]   ;;  %v6655_v63 = vld [vmem:[%s7258_s6 + $0x1] ss:$0 sm:$0xff] }
 0x141   : > { %v959_v40 = vrot.slane %v5881_v24, 1  ;;  %v1334_v26 = vpack.c.bf16 %v6181_v32, %v6181_v32  ;;  %v5520_v24 = vld [vmem:[%s7254_s2 + $0x90] sm:$0xff]   ;;  %v1660_v10 = vpack.c.bf16 %v6290_v52, %v6290_v52  ;;  %v5535_v52 = vld [vmem:[%s7254_s2 + $0x108] sm:$0xff]  }
 0x142   : > { %v5540_v32 = vld [vmem:[%s7255_s3 + $0x70] sm:$0xff]  }
 0x143   : > { %v996_v28 = vsel %vm786_vm3, %v958_v45, %v959_v40 }
 0x144   : > { %4832 = vmatmul.mubr.msk.bf16.gmra.mrb[20].mxu1 %vm277_vm1, %v1043_v49 }
 0x145   : > { %4835 = vmatprep.mubr.msk.bf16.mxu1 %vm277_vm1, %v1053_v17 }
 0x14c   : > { %4836 = vmatmul.mubr.msk.bf16.gmra.mrb[24].mxu1 %vm277_vm1, %v1054_v15 }
 0x14d   : > { %4847 = vmatprep.mubr.msk.bf16.mxu1 %vm277_vm1, %v1037_v1 }
 0x154   : > { %4848 = vmatmul.mubr.msk.bf16.vlgmr.msra.gmra.mrb[12].mxu1 %vm277_vm1, %v6199_v31  ;;  %v5514_v31 = vld [vmem:[%s7254_s2 + $0x20] sm:$0xff]  }
 0x155   : > { %4864 = vmatpush3.bf16.msra.mxu1 %v5510_v58  ;;  %4851 = vmatprep.mubr.msk.bf16.mxu1 %vm277_vm1, %v6203_v43  ;;  %v1044_v58 = vpack.c.bf16 %v6214_v41, %v6214_v41  ;;  %v5516_v41 = vld [vmem:[%s7254_s2 + $0x30] sm:$0xff]  }
 0x156   : > { %4865 = vmatprep.subr.bf16.mxu1 %v5511_v38 }
 0x159   : > { %4866 = vmatpush3.bf16.msra.mxu1 %v5511_v38 }
 0x15a   : > { %4867 = vmatprep.subr.bf16.mxu1 %v5512_v57 }
 0x15c   : > { %4852 = vmatmul.mubr.msk.bf16.gmra.mrb[16].mxu1 %vm277_vm1, %v6270_v14 }
 0x15d   : > { %4855 = vmatprep.mubr.msk.bf16.mxu1 %vm277_vm1, %v1041_v27  ;;  %4868 = vmatpush3.bf16.msra.mxu1 %v5512_v57 }
 0x15e   : > { %4869 = vmatprep.subr.bf16.mxu1 %v5513_v12 }
 0x161   : > { %4870 = vmatpush3.bf16.msra.mxu1 %v5513_v12 }
 0x162   : > { %4887 = vmatprep.subr.bf16.mxu1 %v5514_v31 }
 0x164   : > { %4856 = vmatmul.mubr.msk.bf16.gmra.mrb[20].mxu1 %vm277_vm1, %v1042_v59 }
 0x165   : > { %4859 = vmatprep.mubr.msk.bf16.mxu1 %vm277_vm1, %v1043_v49 }
 0x16c   : > { %4860 = vmatmul.mubr.msk.bf16.gmra.mrb[24].mxu1 %vm277_vm1, %v1044_v58 }
 0x16d   : > { %4871 = vmatprep.mubr.msk.bf16.mxu1 %vm277_vm1, %v6203_v43  ;;  %v5517_v43 = vld [vmem:[%s7254_s2 + $0x38] sm:$0xff]  }
 0x174   : > { %4872 = vmatmul.mubr.msk.bf16.vlgmr.msra.gmra.mrb[12].mxu1 %vm277_vm1, %v6270_v14  ;;  %v5518_v14 = vld [vmem:[%s7254_s2 + $0x80] sm:$0xff]  }
 0x175   : > { %4888 = vmatpush3.bf16.msra.mxu1 %v5514_v31  ;;  %4875 = vmatprep.mubr.msk.bf16.mxu1 %vm277_vm1, %v1041_v27  ;;  %v1333_v27 = vpack.c.bf16 %v6205_v48, %v6220_v54  ;;  %v1491_v54 = vpack.c.bf16 %v6256_v16, %v6256_v16  ;;  %v5524_v16 = vld [vmem:[%s7254_s2 + $0xf0] sm:$0xff]  }
 0x176   : > { %4889 = vmatprep.subr.bf16.mxu1 %v5515_v61 }
 0x179   : > { %4890 = vmatpush3.bf16.msra.mxu1 %v5515_v61 }
 0x17a   : > { %4891 = vmatprep.subr.bf16.mxu1 %v5516_v41 }
 0x17c   : > { %4876 = vmatmul.mubr.msk.bf16.gmra.mrb[16].mxu1 %vm277_vm1, %v1042_v59  ;;  %v995_v59 = vsel %vm786_vm3, %v959_v40, %v960_v44  ;;  %v5522_v44 = vld [vmem:[%s7254_s2 + $0xe0] sm:$0xff]  }
 0x17d   : > { %4879 = vmatprep.mubr.msk.bf16.mxu1 %vm277_vm1, %v1043_v49  ;;  %4892 = vmatpush3.bf16.msra.mxu1 %v5516_v41  ;;  %v1484_v48 = vpack.c.bf16 %v995_v59, %v996_v28 }
 0x17e   : > { %4893 = vmatprep.subr.bf16.mxu1 %v5517_v43 }
 0x181   : > { %4894 = vmatpush3.bf16.msra.mxu1 %v5517_v43 }
 0x182   : > { %4911 = vmatprep.subr.bf16.mxu1 %v5518_v14 }
 0x184   : > { %4880 = vmatmul.mubr.msk.bf16.gmra.mrb[20].mxu1 %vm277_vm1, %v1053_v17 }
 0x185   : > { %4883 = vmatprep.mubr.msk.bf16.mxu1 %vm277_vm1, %v1333_v27 }
 0x18c   : > { %4884 = vmatmul.mubr.msk.bf16.gmra.mrb[24].mxu1 %vm277_vm1, %v1334_v26 }
 0x18d   : > { %4895 = vmatprep.mubr.msk.bf16.mxu1 %vm277_vm1, %v1484_v48 }
 0x194   : > { %4896 = vmatmul.mubr.msk.bf16.vlgmr.msra.gmra.mrb[12].mxu1 %vm277_vm1, %v6229_v9 }
 0x195   : > { %4912 = vmatpush3.bf16.msra.mxu1 %v5518_v14  ;;  %4899 = vmatprep.mubr.msk.bf16.mxu1 %vm277_vm1, %v6295_v2 }
 0x196   : > { %4913 = vmatprep.subr.bf16.mxu1 %v5519_v23 }
 0x199   : > { %4914 = vmatpush3.bf16.msra.mxu1 %v5519_v23 }
 0x19a   : > { %4915 = vmatprep.subr.bf16.mxu1 %v5520_v24 }
 0x19c   : > { %4900 = vmatmul.mubr.msk.bf16.gmra.mrb[16].mxu1 %vm277_vm1, %v6354_v47 }
 0x19d   : > { %4903 = vmatprep.mubr.msk.bf16.mxu1 %vm277_vm1, %v6365_v34  ;;  %4916 = vmatpush3.bf16.msra.mxu1 %v5520_v24 }
 0x19e   : > { %4917 = vmatprep.subr.bf16.mxu1 %v5521_v8 }
 0x1a1   : > { %4918 = vmatpush3.bf16.msra.mxu1 %v5521_v8 }
 0x1a2   : > { %4935 = vmatprep.subr.bf16.mxu1 %v5522_v44 }
 0x1a4   : > { %4904 = vmatmul.mubr.msk.bf16.gmra.mrb[20].mxu1 %vm277_vm1, %v6367_v42 }
 0x1a5   : > { %4907 = vmatprep.mubr.msk.bf16.mxu1 %vm277_vm1, %v6273_v13 }
 0x1ac   : > { %4908 = vmatmul.mubr.msk.bf16.gmra.mrb[24].mxu1 %vm277_vm1, %v1491_v54 }
 0x1ad   : > { %4919 = vmatprep.mubr.msk.bf16.mxu1 %vm277_vm1, %v6229_v9  ;;  %v5525_v9 = vld [vmem:[%s7254_s2 + $0xf8] sm:$0xff]  }
 0x1b4   : > { %4920 = vmatmul.mubr.msk.bf16.vlgmr.msra.gmra.mrb[12].mxu1 %vm277_vm1, %v6295_v2 }
 0x1b5   : > { %4936 = vmatpush3.bf16.msra.mxu1 %v5522_v44  ;;  %4923 = vmatprep.mubr.msk.bf16.mxu1 %vm277_vm1, %v6354_v47 }
 0x1b6   : > { %4937 = vmatprep.subr.bf16.mxu1 %v5523_v7 }
 0x1b9   : > { %4938 = vmatpush3.bf16.msra.mxu1 %v5523_v7 }
 0x1ba   : > { %4939 = vmatprep.subr.bf16.mxu1 %v5524_v16 }
 0x1bc   : > { %4924 = vmatmul.mubr.msk.bf16.gmra.mrb[16].mxu1 %vm277_vm1, %v6365_v34 }
 0x1bd   : > { %4927 = vmatprep.mubr.msk.bf16.mxu1 %vm277_vm1, %v6367_v42  ;;  %4940 = vmatpush3.bf16.msra.mxu1 %v5524_v16 }
 0x1be   : > { %4941 = vmatprep.subr.bf16.mxu1 %v5525_v9 }
 0x1c1   : > { %4942 = vmatpush3.bf16.msra.mxu1 %v5525_v9 }
 0x1c2   : > { %4959 = vmatprep.subr.bf16.mxu1 %v5526_v11 }
 0x1c4   : > { %4928 = vmatmul.mubr.msk.bf16.gmra.mrb[20].mxu1 %vm277_vm1, %v6273_v13 }
 0x1c5   : > { %4931 = vmatprep.mubr.msk.bf16.mxu1 %vm277_vm1, %v6286_v5 }
 0x1cc   : > { %4932 = vmatmul.mubr.msk.bf16.gmra.mrb[24].mxu1 %vm277_vm1, %v1660_v10 }
 0x1cd   : > { %4943 = vmatprep.mubr.msk.bf16.mxu1 %vm277_vm1, %v6295_v2  ;;  %v5529_v2 = vld [vmem:[%s7254_s2 + $0x58] sm:$0xff]  }
 0x1d4   : > { %4944 = vmatmul.mubr.msk.bf16.vlgmr.msra.gmra.mrb[12].mxu1 %vm277_vm1, %v6354_v47  ;;  %v957_v47 = vld [vmem:[#allocation3 + $0x98] sm:$0xff] }
 0x1d5   : > { %4960 = vmatpush3.bf16.msra.mxu1 %v5526_v11  ;;  %4947 = vmatprep.mubr.msk.bf16.mxu1 %vm277_vm1, %v6365_v34  ;;  %v5530_v34 = vld [vmem:[%s7254_s2 + $0xa0] sm:$0xff]   ;;  %v977_v4 = vrot.slane %v957_v47, 1  ;;  %v1016_v35 = vrot.slane %v957_v47, 2 }
 0x1d6   : > { %4961 = vmatprep.subr.bf16.mxu1 %v5527_v46 }
 0x1d9   : > { %4962 = vmatpush3.bf16.msra.mxu1 %v5527_v46 }
 0x1da   : > { %4963 = vmatprep.subr.bf16.mxu1 %v5528_v6 }
 0x1dc   : > { %4948 = vmatmul.mubr.msk.bf16.gmra.mrb[16].mxu1 %vm277_vm1, %v6367_v42 }
 0x1dd   : > { %4951 = vmatprep.mubr.msk.bf16.mxu1 %vm277_vm1, %v6273_v13  ;;  %4964 = vmatpush3.bf16.msra.mxu1 %v5528_v6  ;;  %v978_v13 = vsel %vm786_vm3, %v976_v53, %v977_v4  ;;  %v5532_v53 = vld [vmem:[%s7254_s2 + $0xb0] sm:$0xff]  }
 0x1de   : > { %4965 = vmatprep.subr.bf16.mxu1 %v5529_v2  ;;  %v1811_v42 = vpack.c.bf16 %v978_v13, %v978_v13 }
 0x1e1   : > { %4966 = vmatpush3.bf16.msra.mxu1 %v5529_v2 }
 0x1e2   : > { %4983 = vmatprep.subr.bf16.mxu1 %v5530_v34 }
 0x1e4   : > { %4952 = vmatmul.mubr.msk.bf16.gmra.mrb[20].mxu1 %vm277_vm1, %v6286_v5  ;;  %v5531_v5 = vld [vmem:[%s7254_s2 + $0xa8] sm:$0xff]  }
 0x1e5   : > { %4955 = vmatprep.mubr.msk.bf16.mxu1 %vm277_vm1, %v1810_v37  ;;  %v5536_v37 = vld [vmem:[%s7254_s2 + $0x110] sm:$0xff]  }
 0x1ec   : > { %4956 = vmatmul.mubr.msk.bf16.gmra.mrb[24].mxu1 %vm277_vm1, %v1811_v42 }
 0x1ed   : > { %4967 = vmatprep.mubr.msk.bf16.mxu1 %vm277_vm1, %v1961_v0  ;;  %v5537_v0 = vld [vmem:[%s7254_s2 + $0x118] sm:$0xff]  }
 0x1f4   : > { %4968 = vmatmul.mubr.msk.bf16.vlgmr.msra.gmra.mrb[12].mxu1 %vm277_vm1, %v6302_v60 }
 0x1f5   : > { %4984 = vmatpush3.bf16.msra.mxu1 %v5530_v34  ;;  %4971 = vmatprep.mubr.msk.bf16.mxu1 %vm277_vm1, %v6330_v33 }
 0x1f6   : > { %4985 = vmatprep.subr.bf16.mxu1 %v5531_v5 }
 0x1f9   : > { %4986 = vmatpush3.bf16.msra.mxu1 %v5531_v5 }
 0x1fa   : > { %4987 = vmatprep.subr.bf16.mxu1 %v5532_v53 }
 0x1fc   : > { %4972 = vmatmul.mubr.msk.bf16.gmra.mrb[16].mxu1 %vm277_vm1, %v6375_v36 }
 0x1fd   : > { %4975 = vmatprep.mubr.msk.bf16.mxu1 %vm277_vm1, %v6385_v55  ;;  %4988 = vmatpush3.bf16.msra.mxu1 %v5532_v53 }
 0x1fe   : > { %4989 = vmatprep.subr.bf16.mxu1 %v5533_v29 }
 0x201   : > { %4990 = vmatpush3.bf16.msra.mxu1 %v5533_v29 }
 0x202   : > { %5007 = vmatprep.subr.bf16.mxu1 %v5534_v21 }
 0x204   : > { %4976 = vmatmul.mubr.msk.bf16.gmra.mrb[20].mxu1 %vm277_vm1, %v6387_v19 }
 0x205   : > { %4979 = vmatprep.mubr.msk.bf16.mxu1 %vm277_vm1, %v6332_v30 }
 0x20c   : > { %4980 = vmatmul.mubr.msk.bf16.gmra.mrb[24].mxu1 %vm277_vm1, %v1968_v20 }
 0x20d   : > { %4991 = vmatprep.mubr.msk.bf16.mxu1 %vm277_vm1, %v6302_v60  ;;  %v2137_v60 = vpack.c.bf16 %v6341_v3, %v6341_v3  ;;  %v6644_v3 = vld [vmem:[%s7255_s3] sm:$0xff]  }
 0x214   : > { %4992 = vmatmul.mubr.msk.bf16.vlgmr.msra.gmra.mrb[12].mxu1 %vm277_vm1, %v6330_v33 }
 0x215   : > { %5008 = vmatpush3.bf16.msra.mxu1 %v5534_v21  ;;  %4995 = vmatprep.mubr.msk.bf16.mxu1 %vm277_vm1, %v6375_v36 }
 0x216   : > { %5009 = vmatprep.subr.bf16.mxu1 %v5535_v52 }
 0x219   : > { %5010 = vmatpush3.bf16.msra.mxu1 %v5535_v52 }
 0x21a   : > { %5011 = vmatprep.subr.bf16.mxu1 %v5536_v37 }
 0x21c   : > { %4996 = vmatmul.mubr.msk.bf16.gmra.mrb[16].mxu1 %vm277_vm1, %v6385_v55 }
 0x21d   : > { %4999 = vmatprep.mubr.msk.bf16.mxu1 %vm277_vm1, %v6387_v19  ;;  %5012 = vmatpush3.bf16.msra.mxu1 %v5536_v37 }
 0x21e   : > { %5013 = vmatprep.subr.bf16.mxu1 %v5537_v0 }
 0x221   : > { %5014 = vmatpush3.bf16.msra.mxu1 %v5537_v0 }
 0x224   : > { %5000 = vmatmul.mubr.msk.bf16.gmra.mrb[20].mxu1 %vm277_vm1, %v6332_v30 }
 0x225   : > { %5003 = vmatprep.mubr.msk.bf16.mxu1 %vm277_vm1, %v6337_v56 }
 0x22c   : > { %5004 = vmatmul.mubr.msk.bf16.gmra.mrb[24].mxu1 %vm277_vm1, %v2137_v60 }
 0x22d   : > { %5015 = vmatprep.mubr.msk.bf16.mxu1 %vm277_vm1, %v6330_v33  ;;  %v1018_v33 = vsel %vm1017_vm2, %v1015_v62, %v1016_v35  ;;  %v5541_v62 = vld [vmem:[%s7255_s3 + $0x78] sm:$0xff]  }
 0x234   : > { %5016 = vmatmul.mubr.msk.bf16.vlgmr.msra.gmra.mrb[12].mxu1 %vm277_vm1, %v6375_v36  ;;  %v2288_v36 = vpack.c.bf16 %v1018_v33, %v1018_v33 }
 0x235   : > { %5019 = vmatprep.mubr.msk.bf16.mxu1 %vm277_vm1, %v6385_v55 }
 0x23c   : > { %5020 = vmatmul.mubr.msk.bf16.gmra.mrb[16].mxu1 %vm277_vm1, %v6387_v19 }
 0x23d   : > { %5023 = vmatprep.mubr.msk.bf16.mxu1 %vm277_vm1, %v6332_v30  ;;  %v5538_v30 = vld [vmem:[%s7255_s3 + $0x60] sm:$0xff]  }
 0x23e   : > { %5031 = vmatprep.subr.bf16.mxu0 %v5538_v30 }
 0x23f   : > { %5032 = vmatpush3.bf16.msra.mxu0 %v5538_v30 }
 0x244   : > { %5024 = vmatmul.mubr.msk.bf16.gmra.mrb[20].mxu1 %vm277_vm1, %v6337_v56  ;;  %v5539_v56 = vld [vmem:[%s7255_s3 + $0x68] sm:$0xff]  }
 0x245   : > { %5027 = vmatprep.mubr.msk.bf16.mxu1 %vm277_vm1, %v2287_v22  ;;  %5033 = vmatprep.subr.bf16.mxu0 %v5539_v56 }
 0x246   : > { %5034 = vmatpush3.bf16.msra.mxu0 %v5539_v56 }
 0x247   : > { %5035 = vmatprep.subr.bf16.mxu0 %v5540_v32 }
 0x24a   : > { %5036 = vmatpush3.bf16.msra.mxu0 %v5540_v32 }
 0x24b   : > { %5037 = vmatprep.subr.bf16.mxu0 %v5541_v62 }
 0x24c   : > { %5028 = vmatmul.mubr.msk.bf16.gmra.mrb[24].mxu1 %vm277_vm1, %v2288_v36 }
 0x24e   : > { %5038 = vmatpush3.bf16.msra.mxu0 %v5541_v62 }
 0x24f   : > { %5043 = vmatprep.subr.bf16.mxu0 %v6644_v3 }
 0x307   : > { %v5017_v50 = vpop.f32.mrb[12].mxu1 }
 0x308   : > { %v2445_v51 = vmul.f32 %v5017_v50, %v6650_v39  ;;  %v2361_v55 = vpop.f32.mrb[13].mxu1 }
 0x309   : > { %v2443_v19 = vmul.f32 %v6650_v39, %v2361_v55  ;;  %v5018_v22 = vpop.f32.mrb[14].mxu1 }
 0x30a   : > { %v2465_v49 = vadd.f32 %v6655_v63, %v2445_v51  ;;  %v2446_v17 = vmul.f32 %v5018_v22, %v6650_v39  ;;  %v2364_v1 = vpop.f32.mrb[15].mxu1 }
 0x30b   : > { %v2463_v15 = vadd.f32 %v6655_v63, %v2443_v19  ;;  %v2444_v38 = vmul.f32 %v6650_v39, %v2364_v1 }
 0x30c   : > { %v2480_v57 = vmax.f32 %v2465_v49, 0.0  ;;  %v2466_v12 = vadd.f32 %v6655_v63, %v2446_v17 }
 0x30d   : > { %v2478_v31 = vmax.f32 %v2463_v15, 0.0  ;;  %v2464_v58 = vadd.f32 %v6655_v63, %v2444_v38 }
 0x30e   : > { %v2481_v61 = vmax.f32 %v2466_v12, 0.0  ;;  %v2495_v14 = vrot.slane %v2480_v57, 1 }
 0x30f   : > { %v2479_v41 = vmax.f32 %v2464_v58, 0.0  ;;  %v5021_v43 = vpop.f32.mrb[16].mxu1  ;;  %v6666_v26 = vrot.slane %v2478_v31, 1 }
 0x310   : > { %v2496_v27 = vrot.slane %v2481_v61, 1  ;;  %v2449_v45 = vmul.f32 %v5021_v43, %v6650_v39  ;;  %v2377_v40 = vpop.f32.mrb[17].mxu1 }
 0x311   : > { %v2494_v59 = vrot.slane %v2479_v41, 1  ;;  %v2447_v28 = vmul.f32 %v6650_v39, %v2377_v40  ;;  %v5022_v48 = vpop.f32.mrb[18].mxu1 }
 0x312   : > { %v2519_v23 = vsel %vm786_vm3, %v2495_v14, %v2496_v27  ;;  %v2469_v24 = vadd.f32 %v6655_v63, %v2449_v45  ;;  %v2450_v8 = vmul.f32 %v5022_v48, %v6650_v39  ;;  %v2380_v44 = vpop.f32.mrb[19].mxu1 }
 0x313   : > { %v2525_v54 = vmax.f32 %v2480_v57, %v2519_v23  ;;  %v2520_v7 = vsel %vm786_vm3, %v2494_v59, %v2495_v14  ;;  %v2521_v16 = vsel %vm786_vm3, %v6666_v26, %v2494_v59  ;;  %v2467_v9 = vadd.f32 %v6655_v63, %v2447_v28 }
 0x314   : > { %v2524_v11 = vmax.f32 %v2479_v41, %v2520_v7  ;;  %v2484_v10 = vmax.f32 %v2469_v24, 0.0  ;;  %v2470_v46 = vadd.f32 %v6655_v63, %v2450_v8  ;;  %v2448_v6 = vmul.f32 %v6650_v39, %v2380_v44 }
 0x315   : > { %v2482_v2 = vmax.f32 %v2467_v9, 0.0  ;;  %v6681_v47 = vmax.f32 %v2478_v31, %v2521_v16 }
 0x316   : > { %v2485_v34 = vmax.f32 %v2470_v46, 0.0  ;;  %v2468_v4 = vadd.f32 %v6655_v63, %v2448_v6  ;;  %v2499_v53 = vrot.slane %v2484_v10, 1 }
 0x317   : > { %v2497_v13 = vrot.slane %v2482_v2, 1  ;;  %v5025_v42 = vpop.f32.mrb[20].mxu1  ;;  %v2538_v5 = vmax.f32 %v6681_v47, %v2525_v54 }
 0x318   : > { %v2500_v29 = vrot.slane %v2485_v34, 1  ;;  %v2483_v21 = vmax.f32 %v2468_v4, 0.0  ;;  %v2453_v20 = vmul.f32 %v5025_v42, %v6650_v39  ;;  %v2393_v52 = vpop.f32.mrb[21].mxu1 }
 0x319   : > { %v2518_v37 = vsel %vm786_vm3, %v2496_v27, %v2497_v13  ;;  %v2451_v0 = vmul.f32 %v6650_v39, %v2393_v52  ;;  %v5026_v60 = vpop.f32.mrb[22].mxu1  ;;  %2553 = vst.msk [vmem:[#allocation2] sm:$0xff] %vm277_vm1, %v2538_v5 }
 0x31a   : > { %v2515_v35 = vsel %vm786_vm3, %v2499_v53, %v2500_v29  ;;  %v2498_v33 = vrot.slane %v2483_v21, 1  ;;  %v2526_v36 = vmax.f32 %v2481_v61, %v2518_v37  ;;  %v2473_v30 = vadd.f32 %v6655_v63, %v2453_v20  ;;  %v2396_v56 = vpop.f32.mrb[23].mxu1 }
 0x31b   : > { %v2529_v32 = vmax.f32 %v2484_v10, %v2515_v35  ;;  %v2471_v62 = vadd.f32 %v6655_v63, %v2451_v0  ;;  %v2454_v50 = vmul.f32 %v5026_v60, %v6650_v39  ;;  %v2452_v51 = vmul.f32 %v6650_v39, %v2396_v56  ;;  %v6730_v35 = vld [vmem:[#allocation4] sm:$0xff] }
 0x31c   : > { %v2516_v55 = vsel %vm786_vm3, %v2498_v33, %v2499_v53  ;;  %v2517_v19 = vsel %vm786_vm3, %v2497_v13, %v2498_v33  ;;  %v2539_v22 = vmax.f32 %v2524_v11, %v2526_v36  ;;  %v2488_v49 = vmax.f32 %v2473_v30, 0.0 }
 0x31d   : > { %v2527_v17 = vmax.f32 %v2482_v2, %v2517_v19  ;;  %v2528_v1 = vmax.f32 %v2483_v21, %v2516_v55  ;;  %v2486_v15 = vmax.f32 %v2471_v62, 0.0  ;;  %v2474_v38 = vadd.f32 %v6655_v63, %v2454_v50 }
 0x31e   : > { %2554 = vst.msk [vmem:[#allocation2 + $0x8] sm:$0xff] %vm277_vm1, %v2539_v22  ;;  %v2472_v57 = vadd.f32 %v6655_v63, %v2452_v51  ;;  %v2503_v40 = vrot.slane %v2488_v49, 1 }
 0x31f   : > { %v2540_v12 = vmax.f32 %v2525_v54, %v2527_v17  ;;  %v2542_v31 = vmax.f32 %v2527_v17, %v2529_v32  ;;  %v2501_v58 = vrot.slane %v2486_v15, 1  ;;  %v5029_v61 = vpop.f32.mrb[24].mxu1  ;;  %v2489_v41 = vmax.f32 %v2474_v38, 0.0 }
 0x320   : > { %v2487_v43 = vmax.f32 %v2472_v57, 0.0  ;;  %v2457_v14 = vmul.f32 %v5029_v61, %v6650_v39  ;;  %v2409_v27 = vpop.f32.mrb[25].mxu1  ;;  %v2568_v45 = vld [vmem:[#allocation2] ss:$2 sm:$0xf]  ;;  %v2595_v32 = vrot.slane %v6730_v35, 2 }
 0x321   : > { %2557 = vst.msk [vmem:[#allocation2 + $0x20] sm:$0xff] %vm277_vm1, %v2542_v31  ;;  %2555 = vst.msk [vmem:[#allocation2 + $0x10] sm:$0xff] %vm277_vm1, %v2540_v12  ;;  %v2514_v59 = vsel %vm786_vm3, %v2500_v29, %v2501_v58  ;;  %v2455_v28 = vmul.f32 %v6650_v39, %v2409_v27  ;;  %v5030_v48 = vpop.f32.mrb[26].mxu1  ;;  %v2504_v23 = vrot.slane %v2489_v41, 1  ;;  %v6769_v31 = vld [vmem:[#allocation4 + $0x28] sm:$0xff] }
 0x322   : > { %2570 = vst.msk [vmem:[#allocation4 + $0x9] sm:$0xf] %vm2569_vm4, %v2568_v45  ;;  %v2502_v24 = vrot.slane %v2487_v43, 1  ;;  %v2530_v8 = vmax.f32 %v2485_v34, %v2514_v59  ;;  %v2477_v44 = vadd.f32 %v6655_v63, %v2457_v14  ;;  %v2412_v54 = vpop.f32.mrb[27].mxu1  ;;  %v2600_v61 = vrot.slane %v6769_v31, 2  ;;  %v5543_v14 = vld [vmem:[%s7255_s3 + $0x8] sm:$0xff]  }
 0x323   : > { %v2475_v7 = vadd.f32 %v6655_v63, %v2455_v28  ;;  %v2456_v16 = vmul.f32 %v6650_v39, %v2412_v54  ;;  %v2511_v9 = vsel %vm786_vm3, %v2503_v40, %v2504_v23  ;;  %v5544_v28 = vld [vmem:[%s7255_s3 + $0x10] sm:$0xff]  }
 0x324   : > { %v2512_v11 = vsel %vm786_vm3, %v2502_v24, %v2503_v40  ;;  %v2513_v10 = vsel %vm786_vm3, %v2501_v58, %v2502_v24  ;;  %v2543_v46 = vmax.f32 %v2528_v1, %v2530_v8  ;;  %v2533_v6 = vmax.f32 %v2488_v49, %v2511_v9  ;;  %v5546_v24 = vld [vmem:[%s7255_s3 + $0xc0] sm:$0xff]   ;;  %v5548_v54 = vld [vmem:[%s7255_s3 + $0xd0] sm:$0xff]  }
 0x325   : > { %v2531_v2 = vmax.f32 %v2486_v15, %v2513_v10  ;;  %v2532_v34 = vmax.f32 %v2487_v43, %v2512_v11  ;;  %v2492_v4 = vmax.f32 %v2477_v44, 0.0  ;;  %v2490_v13 = vmax.f32 %v2475_v7, 0.0  ;;  %v5547_v44 = vld [vmem:[%s7255_s3 + $0xc8] sm:$0xff]   ;;  %v5549_v7 = vld [vmem:[%s7255_s3 + $0xd8] sm:$0xff]   ;;  %v5550_v11 = vld [vmem:[%s7255_s3 + $0x20] sm:$0xff]  }
 0x326   : > { %2558 = vst.msk [vmem:[#allocation2 + $0x28] sm:$0xff] %vm277_vm1, %v2543_v46  ;;  %v2476_v42 = vadd.f32 %v6655_v63, %v2456_v16  ;;  %v2583_v9 = vrot.slane %v6730_v35, 1 }
 0x327   : > { %v2546_v39 = vmax.f32 %v2531_v2, %v2533_v6  ;;  %v2507_v5 = vrot.slane %v2492_v4, 1  ;;  %v2505_v53 = vrot.slane %v2490_v13, 1 }
 0x328   : > { %v2491_v29 = vmax.f32 %v2476_v42, 0.0  ;;  %v2571_v21 = vld [vmem:[#allocation2 + $0x20] ss:$2 sm:$0xf]  ;;  %v5553_v42 = vld [vmem:[%s7255_s3 + $0x38] sm:$0xff]  }
 0x329   : > { %2561 = vst.msk [vmem:[#allocation2 + $0x40] sm:$0xff] %vm277_vm1, %v2546_v39  ;;  %v2522_v20 = vsel %vm786_vm3, %v2507_v5, %v6666_v26  ;;  %v2510_v37 = vsel %vm786_vm3, %v2504_v23, %v2505_v53  ;;  %v6728_v63 = vld [vmem:[#allocation4 + $0x8] sm:$0xff] }
 0x32a   : > { %2572 = vst.msk [vmem:[#allocation4 + $0x11] sm:$0xf] %vm2569_vm4, %v2571_v21  ;;  %v2537_v52 = vmax.f32 %v2492_v4, %v2522_v20  ;;  %v2506_v0 = vrot.slane %v2491_v29, 1  ;;  %v2534_v60 = vmax.f32 %v2489_v41, %v2510_v37  ;;  %v2596_v62 = vrot.slane %v6728_v63, 2 }
 0x32b   : > { %v2607_v45 = vpack.c.bf16 %v6728_v63, %v6730_v35  ;;  %v2584_v10 = vrot.slane %v6728_v63, 1  ;;  %v5575_v35 = vld [vmem:[%s7256_s4 + $0x68] sm:$0xff]  }
 0x32c   : > { %v2508_v33 = vsel %vm786_vm3, %v2506_v0, %v2507_v5  ;;  %v2509_v36 = vsel %vm786_vm3, %v2505_v53, %v2506_v0  ;;  %v2547_v56 = vmax.f32 %v2532_v34, %v2534_v60  ;;  %v6757_v17 = vsel %vm1017_vm2, %v2595_v32, %v2596_v62  ;;  %v5551_v34 = vld [vmem:[%s7255_s3 + $0x28] sm:$0xff]   ;;  %v5554_v53 = vld [vmem:[%s7255_s3 + $0x80] sm:$0xff]   ;;  %v5556_v0 = vld [vmem:[%s7255_s3 + $0x90] sm:$0xff]  }
 0x32d   : > { %v2535_v30 = vmax.f32 %v2490_v13, %v2509_v36  ;;  %v2536_v26 = vmax.f32 %v2491_v29, %v2508_v33  ;;  %v2593_v2 = vsel %vm786_vm3, %v2583_v9, %v2584_v10  ;;  %v5552_v13 = vld [vmem:[%s7255_s3 + $0x30] sm:$0xff]   ;;  %v5557_v60 = vld [vmem:[%s7255_s3 + $0x98] sm:$0xff]   ;;  %v5558_v33 = vld [vmem:[%s7255_s3 + $0xe0] sm:$0xff]  }
 0x32e   : > { %2562 = vst.msk [vmem:[#allocation2 + $0x48] sm:$0xff] %vm277_vm1, %v2547_v56  ;;  %v5560_v56 = vld [vmem:[%s7255_s3 + $0xf0] sm:$0xff]  }
 0x32f   : > { %v2550_v50 = vmax.f32 %v2535_v30, %v2537_v52  ;;  %v2551_v51 = vmax.f32 %v2536_v26, %v6681_v47  ;;  %v5555_v52 = vld [vmem:[%s7255_s3 + $0x88] sm:$0xff]  }
 0x330   : > { %v2573_v55 = vld [vmem:[#allocation2 + $0x40] ss:$2 sm:$0xf]  ;;  %v5559_v26 = vld [vmem:[%s7255_s3 + $0xe8] sm:$0xff]  }
 0x331   : > { %v6740_v19 = vld [vmem:[#allocation4 + $0x10] sm:$0xff]  ;;  %2565 = vst.msk [vmem:[#allocation2 + $0x60] sm:$0xff] %vm277_vm1, %v2550_v50  ;;  %2566 = vst.msk [vmem:[#allocation2 + $0x68] sm:$0xff] %vm277_vm1, %v2551_v51  ;;  %v5562_v50 = vld [vmem:[%s7255_s3 + $0x40] sm:$0xff]  }
 0x332   : > { %2574 = vst.msk [vmem:[#allocation4 + $0x19] sm:$0xf] %vm2569_vm4, %v2573_v55  ;;  %v2617_v22 = vpack.c.bf16 %v6740_v19, %v6728_v63  ;;  %v2597_v49 = vrot.slane %v6740_v19, 2  ;;  %v2585_v16 = vrot.slane %v6740_v19, 1  ;;  %v2588_v63 = vrot.slane %v6769_v31, 1 }
 0x334   : > { %5039 = vmatprep.mubr.msk.bf16.mxu0 %vm277_vm1, %v2617_v22  ;;  %v6751_v47 = vsel %vm1017_vm2, %v2596_v62, %v2597_v49  ;;  %v2592_v46 = vsel %vm786_vm3, %v2584_v10, %v2585_v16  ;;  %v5561_v62 = vld [vmem:[%s7255_s3 + $0xf8] sm:$0xff]   ;;  %v2594_v51 = vsel %vm786_vm3, %v2588_v63, %v2583_v9  ;;  %v5564_v22 = vld [vmem:[%s7255_s3 + $0x50] sm:$0xff]  }
 0x335   : > { %v3149_v1 = vpack.c.bf16 %v6751_v47, %v6757_v17  ;;  %v2874_v4 = vpack.c.bf16 %v2592_v46, %v2593_v2  ;;  %v5567_v17 = vld [vmem:[%s7255_s3 + $0xa8] sm:$0xff]  }
 0x338   : > { %v2575_v15 = vld [vmem:[#allocation2 + $0x60] ss:$2 sm:$0xf] }
 0x339   : > { %v6761_v38 = vld [vmem:[#allocation4 + $0x18] sm:$0xff]  ;;  %2576 = vst.msk [vmem:[#allocation4 + $0x21] sm:$0xf] %vm2569_vm4, %v2575_v15  ;;  %v5566_v15 = vld [vmem:[%s7255_s3 + $0xa0] sm:$0xff]  }
 0x33a   : > { %v2598_v57 = vrot.slane %v6761_v38, 2  ;;  %v2608_v8 = vpack.c.bf16 %v6761_v38, %v6740_v19  ;;  %v2586_v5 = vrot.slane %v6761_v38, 1  ;;  %v5563_v19 = vld [vmem:[%s7255_s3 + $0x48] sm:$0xff]  }
 0x33c   : > { %v6767_v12 = vsel %vm1017_vm2, %v2597_v49, %v2598_v57  ;;  %v2591_v21 = vsel %vm786_vm3, %v2585_v16, %v2586_v5  ;;  %v5565_v49 = vld [vmem:[%s7255_s3 + $0x58] sm:$0xff]  }
 0x33d   : > { %v3242_v58 = vpack.c.bf16 %v6767_v12, %v6751_v47  ;;  %v2967_v37 = vpack.c.bf16 %v2591_v21, %v2592_v46  ;;  %v5571_v47 = vld [vmem:[%s7255_s3 + $0x108] sm:$0xff]  }
 0x340   : > { %v6774_v41 = vld [vmem:[#allocation4 + $0x20] sm:$0xff] }
 0x341   : > { %v2618_v43 = vpack.c.bf16 %v6774_v41, %v6761_v38  ;;  %v2599_v27 = vrot.slane %v6774_v41, 2  ;;  %v2785_v6 = vpack.c.bf16 %v6769_v31, %v6774_v41  ;;  %v2587_v39 = vrot.slane %v6774_v41, 1  ;;  %v5569_v38 = vld [vmem:[%s7255_s3 + $0xb8] sm:$0xff]  }
 0x342   : > { %v2606_v41 = vsel %vm1017_vm2, %v2600_v61, %v2595_v32  ;;  %v5576_v32 = vld [vmem:[%s7256_s4 + $0x70] sm:$0xff]   ;;  %v5577_v31 = vld [vmem:[%s7256_s4 + $0x78] sm:$0xff]  }
 0x343   : > { %5040 = vmatmul.mubr.msk.bf16.vlgmr.msra.gmra.mrb[20].mxu0 %vm277_vm1, %v2618_v43  ;;  %v6787_v40 = vsel %vm1017_vm2, %v2598_v57, %v2599_v27  ;;  %v6793_v59 = vsel %vm1017_vm2, %v2599_v27, %v2600_v61  ;;  %v2590_v29 = vsel %vm786_vm3, %v2586_v5, %v2587_v39  ;;  %v2589_v36 = vsel %vm786_vm3, %v2587_v39, %v2588_v63  ;;  %v5570_v57 = vld [vmem:[%s7255_s3 + $0x100] sm:$0xff]   ;;  %v6984_v63 = vld [vmem:[#allocation5 + $0x18] sm:$0xff] }
 0x344   : > { %5044 = vmatpush3.bf16.msra.mxu0 %v6644_v3  ;;  %5051 = vmatprep.mubr.msk.bf16.mxu0 %vm277_vm1, %v2607_v45  ;;  %v6802_v48 = vpack.c.bf16 %v6787_v40, %v6767_v12  ;;  %v3243_v23 = vpack.c.bf16 %v6793_v59, %v6787_v40  ;;  %v5545_v3 = vld [vmem:[%s7255_s3 + $0x18] sm:$0xff]   ;;  %v2875_v20 = vpack.c.bf16 %v2590_v29, %v2591_v21  ;;  %v5572_v12 = vld [vmem:[%s7255_s3 + $0x110] sm:$0xff]   ;;  %v4501_v61 = vld [vmem:[%s7257_s5 + $0x2] ss:$0 sm:$0xff] }
 0x345   : > { %5045 = vmatprep.subr.bf16.mxu0 %v5543_v14  ;;  %v2968_v30 = vpack.c.bf16 %v2589_v36, %v2590_v29  ;;  %v3060_v55 = vpack.c.bf16 %v2594_v51, %v2589_v36  ;;  %v3335_v43 = vpack.c.bf16 %v2606_v41, %v6793_v59  ;;  %v4502_v45 = vld [vmem:[%s7258_s6 + $0x2] ss:$0 sm:$0xff]  ;;  %v3487_v36 = vrot.slane %v6984_v63, 2  ;;  %v5584_v41 = vld [vmem:[%s7256_s4 + $0xd0] sm:$0xff]  }
 0x348   : > { %5046 = vmatpush3.bf16.msra.mxu0 %v5543_v14  ;;  %v5574_v14 = vld [vmem:[%s7256_s4 + $0x60] sm:$0xff]  }
 0x349   : > { %5047 = vmatprep.subr.bf16.mxu0 %v5544_v28 }
 0x34c   : > { %5048 = vmatpush3.bf16.msra.mxu0 %v5544_v28 }
 0x34d   : > { %5049 = vmatprep.subr.bf16.mxu0 %v5545_v3 }
 0x350   : > { %5050 = vmatpush3.bf16.msra.mxu0 %v5545_v3 }
 0x351   : > { %5055 = vmatprep.subr.bf16.mxu0 %v5546_v24 }
 0x353   : > { %5052 = vmatmul.mubr.msk.bf16.vlgmr.msra.gmra.mrb[20].mxu0 %vm277_vm1, %v2608_v8 }
 0x354   : > { %5056 = vmatpush3.bf16.msra.mxu0 %v5546_v24  ;;  %5063 = vmatprep.mubr.msk.bf16.mxu0 %vm277_vm1, %v2608_v8 }
 0x355   : > { %5057 = vmatprep.subr.bf16.mxu0 %v5547_v44 }
 0x358   : > { %5058 = vmatpush3.bf16.msra.mxu0 %v5547_v44 }
 0x359   : > { %5059 = vmatprep.subr.bf16.mxu0 %v5548_v54 }
 0x35c   : > { %5060 = vmatpush3.bf16.msra.mxu0 %v5548_v54 }
 0x35d   : > { %5061 = vmatprep.subr.bf16.mxu0 %v5549_v7 }
 0x360   : > { %5062 = vmatpush3.bf16.msra.mxu0 %v5549_v7 }
 0x361   : > { %5067 = vmatprep.subr.bf16.mxu0 %v5550_v11 }
 0x363   : > { %5064 = vmatmul.mubr.msk.bf16.vlgmr.msra.gmra.mrb[20].mxu0 %vm277_vm1, %v2785_v6 }
 0x364   : > { %5068 = vmatpush3.bf16.msra.mxu0 %v5550_v11  ;;  %5075 = vmatprep.mubr.msk.bf16.mxu0 %vm277_vm1, %v2874_v4 }
 0x365   : > { %5069 = vmatprep.subr.bf16.mxu0 %v5551_v34 }
 0x368   : > { %5070 = vmatpush3.bf16.msra.mxu0 %v5551_v34 }
 0x369   : > { %5071 = vmatprep.subr.bf16.mxu0 %v5552_v13 }
 0x36c   : > { %5072 = vmatpush3.bf16.msra.mxu0 %v5552_v13 }
 0x36d   : > { %5073 = vmatprep.subr.bf16.mxu0 %v5553_v42 }
 0x370   : > { %5074 = vmatpush3.bf16.msra.mxu0 %v5553_v42 }
 0x371   : > { %5079 = vmatprep.subr.bf16.mxu0 %v5554_v53 }
 0x373   : > { %5076 = vmatmul.mubr.msk.bf16.vlgmr.msra.gmra.mrb[20].mxu0 %vm277_vm1, %v2875_v20 }
 0x374   : > { %5080 = vmatpush3.bf16.msra.mxu0 %v5554_v53  ;;  %5087 = vmatprep.mubr.msk.bf16.mxu0 %vm277_vm1, %v2967_v37 }
 0x375   : > { %5081 = vmatprep.subr.bf16.mxu0 %v5555_v52 }
 0x378   : > { %5082 = vmatpush3.bf16.msra.mxu0 %v5555_v52 }
 0x379   : > { %5083 = vmatprep.subr.bf16.mxu0 %v5556_v0 }
 0x37c   : > { %5084 = vmatpush3.bf16.msra.mxu0 %v5556_v0 }
 0x37d   : > { %5085 = vmatprep.subr.bf16.mxu0 %v5557_v60 }
 0x380   : > { %5086 = vmatpush3.bf16.msra.mxu0 %v5557_v60 }
 0x381   : > { %5091 = vmatprep.subr.bf16.mxu0 %v5558_v33 }
 0x383   : > { %5088 = vmatmul.mubr.msk.bf16.vlgmr.msra.gmra.mrb[20].mxu0 %vm277_vm1, %v2968_v30 }
 0x384   : > { %5092 = vmatpush3.bf16.msra.mxu0 %v5558_v33  ;;  %5099 = vmatprep.mubr.msk.bf16.mxu0 %vm277_vm1, %v2875_v20  ;;  %v6986_v33 = vld [vmem:[#allocation5] sm:$0xff] }
 0x385   : > { %5093 = vmatprep.subr.bf16.mxu0 %v5559_v26 }
 0x388   : > { %5094 = vmatpush3.bf16.msra.mxu0 %v5559_v26 }
 0x389   : > { %5095 = vmatprep.subr.bf16.mxu0 %v5560_v56 }
 0x38c   : > { %5096 = vmatpush3.bf16.msra.mxu0 %v5560_v56  ;;  %v5578_v56 = vld [vmem:[%s7256_s4] sm:$0xff]  }
 0x38d   : > { %5097 = vmatprep.subr.bf16.mxu0 %v5561_v62 }
 0x390   : > { %5098 = vmatpush3.bf16.msra.mxu0 %v5561_v62  ;;  %v3484_v62 = vrot.slane %v6986_v33, 2 }
 0x391   : > { %5103 = vmatprep.subr.bf16.mxu0 %v5562_v50 }
 0x393   : > { %5100 = vmatmul.mubr.msk.bf16.vlgmr.msra.gmra.mrb[20].mxu0 %vm277_vm1, %v3060_v55 }
 0x394   : > { %5104 = vmatpush3.bf16.msra.mxu0 %v5562_v50  ;;  %5111 = vmatprep.mubr.msk.bf16.mxu0 %vm277_vm1, %v3149_v1  ;;  %v5568_v1 = vld [vmem:[%s7255_s3 + $0xb0] sm:$0xff]  }
 0x395   : > { %5105 = vmatprep.subr.bf16.mxu0 %v5563_v19 }
 0x398   : > { %5106 = vmatpush3.bf16.msra.mxu0 %v5563_v19 }
 0x399   : > { %5107 = vmatprep.subr.bf16.mxu0 %v5564_v22 }
 0x39c   : > { %5108 = vmatpush3.bf16.msra.mxu0 %v5564_v22 }
 0x39d   : > { %5109 = vmatprep.subr.bf16.mxu0 %v5565_v49 }
 0x3a0   : > { %5110 = vmatpush3.bf16.msra.mxu0 %v5565_v49  ;;  %v5579_v49 = vld [vmem:[%s7256_s4 + $0x8] sm:$0xff]  }
 0x3a1   : > { %5115 = vmatprep.subr.bf16.mxu0 %v5566_v15 }
 0x3a3   : > { %5112 = vmatmul.mubr.msk.bf16.vlgmr.msra.gmra.mrb[20].mxu0 %vm277_vm1, %v6802_v48 }
 0x3a4   : > { %5116 = vmatpush3.bf16.msra.mxu0 %v5566_v15  ;;  %5123 = vmatprep.mubr.msk.bf16.mxu0 %vm277_vm1, %v3242_v58  ;;  %v5573_v58 = vld [vmem:[%s7255_s3 + $0x118] sm:$0xff]  }
 0x3a5   : > { %5117 = vmatprep.subr.bf16.mxu0 %v5567_v17 }
 0x3a8   : > { %5118 = vmatpush3.bf16.msra.mxu0 %v5567_v17 }
 0x3a9   : > { %5119 = vmatprep.subr.bf16.mxu0 %v5568_v1 }
 0x3ac   : > { %5120 = vmatpush3.bf16.msra.mxu0 %v5568_v1 }
 0x3ad   : > { %5121 = vmatprep.subr.bf16.mxu0 %v5569_v38 }
 0x3b0   : > { %5122 = vmatpush3.bf16.msra.mxu0 %v5569_v38  ;;  %v5580_v38 = vld [vmem:[%s7256_s4 + $0x10] sm:$0xff]  }
 0x3b1   : > { %5127 = vmatprep.subr.bf16.mxu0 %v5570_v57 }
 0x3b3   : > { %5124 = vmatmul.mubr.msk.bf16.vlgmr.msra.gmra.mrb[20].mxu0 %vm277_vm1, %v3243_v23 }
 0x3b4   : > { %5128 = vmatpush3.bf16.msra.mxu0 %v5570_v57  ;;  %5135 = vmatprep.mubr.msk.bf16.mxu0 %vm277_vm1, %v6802_v48  ;;  %v5581_v57 = vld [vmem:[%s7256_s4 + $0x18] sm:$0xff]  }
 0x3b5   : > { %5129 = vmatprep.subr.bf16.mxu0 %v5571_v47 }
 0x3b8   : > { %5130 = vmatpush3.bf16.msra.mxu0 %v5571_v47  ;;  %v5582_v47 = vld [vmem:[%s7256_s4 + $0xc0] sm:$0xff]  }
 0x3b9   : > { %5131 = vmatprep.subr.bf16.mxu0 %v5572_v12 }
 0x3bc   : > { %5132 = vmatpush3.bf16.msra.mxu0 %v5572_v12 }
 0x3bd   : > { %5133 = vmatprep.subr.bf16.mxu0 %v5573_v58 }
 0x3c0   : > { %5134 = vmatpush3.bf16.msra.mxu0 %v5573_v58  ;;  %v5583_v58 = vld [vmem:[%s7256_s4 + $0xc8] sm:$0xff]  }
 0x3c1   : > { %5139 = vmatprep.subr.bf16.mxu0 %v5674_v18 }
 0x3c3   : > { %5136 = vmatmul.mubr.msk.bf16.vlgmr.msra.gmra.mrb[20].mxu0 %vm277_vm1, %v3335_v43  ;;  %v5585_v43 = vld [vmem:[%s7256_s4 + $0xd8] sm:$0xff]  }
 0x3c4   : > { %5147 = vmatprep.mubr.msk.bf16.mxu0 %vm5675_vm5, %v5674_v18  ;;  %5140 = vmatpush3.bf16.msra.mxu0 %v5574_v14  ;;  %v5586_v14 = vld [vmem:[%s7256_s4 + $0x20] sm:$0xff]  }
 0x3c5   : > { %5141 = vmatprep.subr.bf16.mxu0 %v5674_v18 }
 0x3c8   : > { %5142 = vmatpush3.bf16.msra.mxu0 %v5575_v35 }
 0x3c9   : > { %5143 = vmatprep.subr.bf16.mxu0 %v5674_v18 }
 0x3cc   : > { %5144 = vmatpush3.bf16.msra.mxu0 %v5576_v32  ;;  %v5587_v32 = vld [vmem:[%s7256_s4 + $0x28] sm:$0xff]  }
 0x3cd   : > { %5145 = vmatprep.subr.bf16.mxu0 %v5674_v18 }
 0x3d0   : > { %5146 = vmatpush3.bf16.msra.mxu0 %v5577_v31  ;;  %v5588_v31 = vld [vmem:[%s7256_s4 + $0x30] sm:$0xff]  }
 0x3d1   : > { %5151 = vmatprep.subr.bf16.mxu0 %v5674_v18 }
 0x496   : > { %v5137_v27 = vpop.f32.mrb[20].mxu0 }
 0x497   : > { %v3431_v40 = vmul.f32 %v5137_v27, %v4501_v61  ;;  %v3405_v59 = vpop.f32.mrb[21].mxu0 }
 0x498   : > { %v3429_v28 = vmul.f32 %v4501_v61, %v3405_v59  ;;  %v5138_v48 = vpop.f32.mrb[22].mxu0 }
 0x499   : > { %v3440_v23 = vadd.f32 %v4502_v45, %v3431_v40  ;;  %v3432_v3 = vmul.f32 %v5138_v48, %v4501_v61  ;;  %v3408_v24 = vpop.f32.mrb[23].mxu0  ;;  %v5589_v40 = vld [vmem:[%s7256_s4 + $0x38] sm:$0xff]   ;;  %v5590_v48 = vld [vmem:[%s7256_s4 + $0x80] sm:$0xff]  }
 0x49a   : > { %v3438_v8 = vadd.f32 %v4502_v45, %v3429_v28  ;;  %v3430_v44 = vmul.f32 %v4501_v61, %v3408_v24  ;;  %v3476_v61 = vrot.slane %v6986_v33, 1  ;;  %v5592_v24 = vld [vmem:[%s7256_s4 + $0x90] sm:$0xff]  }
 0x49b   : > { %v3444_v54 = vmax.f32 %v3440_v23, 0.0  ;;  %v3441_v7 = vadd.f32 %v4502_v45, %v3432_v3  ;;  %v5591_v3 = vld [vmem:[%s7256_s4 + $0x88] sm:$0xff]  }
 0x49c   : > { %v3442_v16 = vmax.f32 %v3438_v8, 0.0  ;;  %v3439_v9 = vadd.f32 %v4502_v45, %v3430_v44  ;;  %v3479_v8 = vrot.slane %v6984_v63, 1  ;;  %v5593_v44 = vld [vmem:[%s7256_s4 + $0x98] sm:$0xff]  }
 0x49d   : > { %v3445_v11 = vmax.f32 %v3441_v7, 0.0  ;;  %v3448_v6 = vrot.slane %v3444_v54, 1  ;;  %v5594_v7 = vld [vmem:[%s7256_s4 + $0xe0] sm:$0xff]  }
 0x49e   : > { %v3446_v10 = vrot.slane %v3442_v16, 1  ;;  %v3443_v46 = vmax.f32 %v3439_v9, 0.0  ;;  %v5595_v9 = vld [vmem:[%s7256_s4 + $0xe8] sm:$0xff]  }
 0x49f   : > { %v3449_v2 = vrot.slane %v3445_v11, 1 }
 0x4a0   : > { %v3447_v34 = vrot.slane %v3443_v46, 1 }
 0x4a1   : > { %v3450_v4 = vsel %vm786_vm3, %v3448_v6, %v3449_v2  ;;  %v3453_v13 = vsel %vm786_vm3, %v3449_v2, %v3446_v10 }
 0x4a2   : > { %v3456_v42 = vmax.f32 %v3444_v54, %v3450_v4  ;;  %v3457_v39 = vmax.f32 %v3445_v11, %v3453_v13  ;;  %v3451_v5 = vsel %vm786_vm3, %v3447_v34, %v3448_v6  ;;  %v3452_v53 = vsel %vm786_vm3, %v3446_v10, %v3447_v34  ;;  %v5596_v11 = vld [vmem:[%s7256_s4 + $0xf0] sm:$0xff]   ;;  %v5597_v10 = vld [vmem:[%s7256_s4 + $0xf8] sm:$0xff]   ;;  %v5598_v6 = vld [vmem:[%s7256_s4 + $0x40] sm:$0xff]  }
 0x4a3   : > { %v3454_v29 = vmax.f32 %v3442_v16, %v3452_v53  ;;  %v3455_v21 = vmax.f32 %v3443_v46, %v3451_v5  ;;  %v3483_v46 = vsel %vm786_vm3, %v3479_v8, %v3476_v61  ;;  %v5599_v34 = vld [vmem:[%s7256_s4 + $0x48] sm:$0xff]   ;;  %v5600_v4 = vld [vmem:[%s7256_s4 + $0x50] sm:$0xff]   ;;  %v5601_v13 = vld [vmem:[%s7256_s4 + $0x58] sm:$0xff]  }
 0x4a4   : > { %v3460_v20 = vmax.f32 %v3456_v42, %v3457_v39  ;;  %v5603_v39 = vld [vmem:[%s7256_s4 + $0xa8] sm:$0xff]   ;;  %v5604_v5 = vld [vmem:[%s7256_s4 + $0xb0] sm:$0xff]   ;;  %v5605_v53 = vld [vmem:[%s7256_s4 + $0xb8] sm:$0xff]  }
 0x4a5   : > { %v3458_v52 = vmax.f32 %v3454_v29, %v3455_v21  ;;  %v3459_v37 = vmax.f32 %v3455_v21, %v3456_v42  ;;  %v5602_v42 = vld [vmem:[%s7256_s4 + $0xa0] sm:$0xff]   ;;  %v5607_v21 = vld [vmem:[%s7256_s4 + $0x108] sm:$0xff]  }
 0x4a6   : > { %3464 = vst.msk [vmem:[#allocation2 + $0x10] sm:$0xff] %vm277_vm1, %v3460_v20  ;;  %v5606_v29 = vld [vmem:[%s7256_s4 + $0x100] sm:$0xff]   ;;  %v5608_v20 = vld [vmem:[%s7256_s4 + $0x110] sm:$0xff]  }
 0x4a7   : > { %3462 = vst.msk [vmem:[#allocation2] sm:$0xff] %vm277_vm1, %v3458_v52  ;;  %3463 = vst.msk [vmem:[#allocation2 + $0x8] sm:$0xff] %vm277_vm1, %v3459_v37  ;;  %v5609_v52 = vld [vmem:[%s7256_s4 + $0x118] sm:$0xff]   ;;  %v3491_v37 = vsel %vm1017_vm2, %v3487_v36, %v3484_v62 }
 0x4ad   : > { %v3470_v0 = vld [vmem:[#allocation2 + $0x10] ss:$2 sm:$0x3] }
 0x4ae   : > { %3471 = vst.msk [vmem:[#allocation5 + $0x11] sm:$0x3] %vm3467_vm6, %v3470_v0  ;;  %v3466_v60 = vld [vmem:[#allocation2] ss:$2 sm:$0x3] }
 0x4af   : > { %3468 = vst.msk [vmem:[#allocation5 + $0x9] sm:$0x3] %vm3467_vm6, %v3466_v60  ;;  %v4548_v60 = vld [vmem:[%s7257_s5 + $0x3] ss:$0 sm:$0xff] }
 0x4b5   : > { %v6989_v30 = vld [vmem:[#allocation5 + $0x10] sm:$0xff] }
 0x4b6   : > { %v3473_v26 = vld [vmem:[#allocation5 + $0x8] sm:$0xff]  ;;  %v3486_v50 = vrot.slane %v6989_v30, 2  ;;  %v3646_v35 = vpack.c.bf16 %v6984_v63, %v6989_v30  ;;  %v3478_v45 = vrot.slane %v6989_v30, 1 }
 0x4b7   : > { %v3501_v51 = vpack.c.bf16 %v6989_v30, %v3473_v26  ;;  %v3485_v55 = vrot.slane %v3473_v26, 2  ;;  %v3492_v12 = vpack.c.bf16 %v3473_v26, %v6986_v33  ;;  %v3477_v27 = vrot.slane %v3473_v26, 1 }
 0x4b8   : > { %v7001_v19 = vsel %vm1017_vm2, %v3486_v50, %v3487_v36  ;;  %v3480_v54 = vsel %vm786_vm3, %v3478_v45, %v3479_v8 }
 0x4b9   : > { %5148 = vmatmul.mubr.msk.bf16.vlgmr.msra.gmra.mrb[24].mxu0 %vm277_vm1, %v3501_v51  ;;  %v7006_v22 = vsel %vm1017_vm2, %v3485_v55, %v3486_v50  ;;  %v7017_v15 = vsel %vm1017_vm2, %v3484_v62, %v3485_v55  ;;  %v3481_v59 = vsel %vm786_vm3, %v3477_v27, %v3478_v45  ;;  %v3482_v28 = vsel %vm786_vm3, %v3476_v61, %v3477_v27 }
 0x4ba   : > { %5152 = vmatpush3.bf16.msra.mxu0 %v5578_v56  ;;  %5159 = vmatprep.mubr.msk.bf16.mxu0 %vm5675_vm5, %v5674_v18  ;;  %v3962_v17 = vpack.c.bf16 %v7006_v22, %v7017_v15  ;;  %v4041_v1 = vpack.c.bf16 %v7001_v19, %v7006_v22  ;;  %v3725_v23 = vpack.c.bf16 %v3481_v59, %v3482_v28 }
 0x4bb   : > { %5153 = vmatprep.subr.bf16.mxu0 %v5674_v18  ;;  %v3804_v16 = vpack.c.bf16 %v3480_v54, %v3481_v59  ;;  %v3883_v2 = vpack.c.bf16 %v3483_v46, %v3480_v54  ;;  %v4120_v0 = vpack.c.bf16 %v3491_v37, %v7001_v19 }
 0x4be   : > { %5154 = vmatpush3.bf16.msra.mxu0 %v5579_v49 }
 0x4bf   : > { %5155 = vmatprep.subr.bf16.mxu0 %v5674_v18 }
 0x4c2   : > { %5156 = vmatpush3.bf16.msra.mxu0 %v5580_v38 }
 0x4c3   : > { %5157 = vmatprep.subr.bf16.mxu0 %v5674_v18 }
 0x4c6   : > { %5158 = vmatpush3.bf16.msra.mxu0 %v5581_v57 }
 0x4c7   : > { %5163 = vmatprep.subr.bf16.mxu0 %v5674_v18 }
 0x4c9   : > { %5160 = vmatmul.mubr.msk.bf16.vlgmr.msra.gmra.mrb[24].mxu0 %vm277_vm1, %v3492_v12 }
 0x4ca   : > { %5164 = vmatpush3.bf16.msra.mxu0 %v5582_v47  ;;  %5171 = vmatprep.mubr.msk.bf16.mxu0 %vm5675_vm5, %v5674_v18 }
 0x4cb   : > { %5165 = vmatprep.subr.bf16.mxu0 %v5674_v18 }
 0x4ce   : > { %5166 = vmatpush3.bf16.msra.mxu0 %v5583_v58 }
 0x4cf   : > { %5167 = vmatprep.subr.bf16.mxu0 %v5674_v18 }
 0x4d2   : > { %5168 = vmatpush3.bf16.msra.mxu0 %v5584_v41 }
 0x4d3   : > { %5169 = vmatprep.subr.bf16.mxu0 %v5674_v18 }
 0x4d6   : > { %5170 = vmatpush3.bf16.msra.mxu0 %v5585_v43 }
 0x4d7   : > { %5175 = vmatprep.subr.bf16.mxu0 %v5674_v18 }
 0x4d9   : > { %5172 = vmatmul.mubr.msk.bf16.vlgmr.msra.gmra.mrb[24].mxu0 %vm277_vm1, %v3646_v35 }
 0x4da   : > { %5176 = vmatpush3.bf16.msra.mxu0 %v5586_v14  ;;  %5183 = vmatprep.mubr.msk.bf16.mxu0 %vm5675_vm5, %v5674_v18 }
 0x4db   : > { %5177 = vmatprep.subr.bf16.mxu0 %v5674_v18 }
 0x4de   : > { %5178 = vmatpush3.bf16.msra.mxu0 %v5587_v32 }
 0x4df   : > { %5179 = vmatprep.subr.bf16.mxu0 %v5674_v18 }
 0x4e2   : > { %5180 = vmatpush3.bf16.msra.mxu0 %v5588_v31 }
 0x4e3   : > { %5181 = vmatprep.subr.bf16.mxu0 %v5674_v18 }
 0x4e6   : > { %5182 = vmatpush3.bf16.msra.mxu0 %v5589_v40 }
 0x4e7   : > { %5187 = vmatprep.subr.bf16.mxu0 %v5674_v18 }
 0x4e9   : > { %5184 = vmatmul.mubr.msk.bf16.vlgmr.msra.gmra.mrb[24].mxu0 %vm277_vm1, %v3725_v23 }
 0x4ea   : > { %5188 = vmatpush3.bf16.msra.mxu0 %v5590_v48  ;;  %5195 = vmatprep.mubr.msk.bf16.mxu0 %vm5675_vm5, %v5674_v18 }
 0x4eb   : > { %5189 = vmatprep.subr.bf16.mxu0 %v5674_v18 }
 0x4ee   : > { %5190 = vmatpush3.bf16.msra.mxu0 %v5591_v3 }
 0x4ef   : > { %5191 = vmatprep.subr.bf16.mxu0 %v5674_v18 }
 0x4f2   : > { %5192 = vmatpush3.bf16.msra.mxu0 %v5592_v24 }
 0x4f3   : > { %5193 = vmatprep.subr.bf16.mxu0 %v5674_v18 }
 0x4f6   : > { %5194 = vmatpush3.bf16.msra.mxu0 %v5593_v44 }
 0x4f7   : > { %5199 = vmatprep.subr.bf16.mxu0 %v5674_v18 }
 0x4f9   : > { %5196 = vmatmul.mubr.msk.bf16.vlgmr.msra.gmra.mrb[24].mxu0 %vm277_vm1, %v3804_v16 }
 0x4fa   : > { %5200 = vmatpush3.bf16.msra.mxu0 %v5594_v7  ;;  %5207 = vmatprep.mubr.msk.bf16.mxu0 %vm5675_vm5, %v5674_v18 }
 0x4fb   : > { %5201 = vmatprep.subr.bf16.mxu0 %v5674_v18 }
 0x4fe   : > { %5202 = vmatpush3.bf16.msra.mxu0 %v5595_v9 }
 0x4ff   : > { %5203 = vmatprep.subr.bf16.mxu0 %v5674_v18 }
 0x502   : > { %5204 = vmatpush3.bf16.msra.mxu0 %v5596_v11 }
 0x503   : > { %5205 = vmatprep.subr.bf16.mxu0 %v5674_v18 }
 0x506   : > { %5206 = vmatpush3.bf16.msra.mxu0 %v5597_v10 }
 0x507   : > { %5211 = vmatprep.subr.bf16.mxu0 %v5674_v18 }
 0x509   : > { %5208 = vmatmul.mubr.msk.bf16.vlgmr.msra.gmra.mrb[24].mxu0 %vm277_vm1, %v3883_v2 }
 0x50a   : > { %5212 = vmatpush3.bf16.msra.mxu0 %v5598_v6  ;;  %5219 = vmatprep.mubr.msk.bf16.mxu0 %vm5675_vm5, %v5674_v18 }
 0x50b   : > { %5213 = vmatprep.subr.bf16.mxu0 %v5674_v18 }
 0x50e   : > { %5214 = vmatpush3.bf16.msra.mxu0 %v5599_v34 }
 0x50f   : > { %5215 = vmatprep.subr.bf16.mxu0 %v5674_v18 }
 0x512   : > { %5216 = vmatpush3.bf16.msra.mxu0 %v5600_v4 }
 0x513   : > { %5217 = vmatprep.subr.bf16.mxu0 %v5674_v18 }
 0x516   : > { %5218 = vmatpush3.bf16.msra.mxu0 %v5601_v13 }
 0x517   : > { %5223 = vmatprep.subr.bf16.mxu0 %v5674_v18 }
 0x519   : > { %5220 = vmatmul.mubr.msk.bf16.vlgmr.msra.gmra.mrb[24].mxu0 %vm277_vm1, %v3962_v17 }
 0x51a   : > { %5224 = vmatpush3.bf16.msra.mxu0 %v5602_v42  ;;  %5231 = vmatprep.mubr.msk.bf16.mxu0 %vm5675_vm5, %v5674_v18 }
 0x51b   : > { %5225 = vmatprep.subr.bf16.mxu0 %v5674_v18 }
 0x51e   : > { %5226 = vmatpush3.bf16.msra.mxu0 %v5603_v39 }
 0x51f   : > { %5227 = vmatprep.subr.bf16.mxu0 %v5674_v18 }
 0x522   : > { %5228 = vmatpush3.bf16.msra.mxu0 %v5604_v5 }
 0x523   : > { %5229 = vmatprep.subr.bf16.mxu0 %v5674_v18 }
 0x526   : > { %5230 = vmatpush3.bf16.msra.mxu0 %v5605_v53 }
 0x527   : > { %5235 = vmatprep.subr.bf16.mxu0 %v5674_v18 }
 0x529   : > { %5232 = vmatmul.mubr.msk.bf16.vlgmr.msra.gmra.mrb[24].mxu0 %vm277_vm1, %v4041_v1 }
 0x52a   : > { %5236 = vmatpush3.bf16.msra.mxu0 %v5606_v29  ;;  %5243 = vmatprep.mubr.msk.bf16.mxu0 %vm5675_vm5, %v5674_v18 }
 0x52b   : > { %5237 = vmatprep.subr.bf16.mxu0 %v5674_v18 }
 0x52e   : > { %5238 = vmatpush3.bf16.msra.mxu0 %v5607_v21 }
 0x52f   : > { %5239 = vmatprep.subr.bf16.mxu0 %v5674_v18 }
 0x532   : > { %5240 = vmatpush3.bf16.msra.mxu0 %v5608_v20 }
 0x533   : > { %5241 = vmatprep.subr.bf16.mxu0 %v5674_v18  ;;  %v4549_v18 = vld [vmem:[%s7258_s6 + $0x3] ss:$0 sm:$0xff] }
 0x536   : > { %5242 = vmatpush3.bf16.msra.mxu0 %v5609_v52 }
 0x539   : > { %5244 = vmatmul.mubr.msk.bf16.vlgmr.msra.gmra.mrb[24].mxu0 %vm277_vm1, %v4120_v0 }
 0x60c   : > { %v4190_v30 = vpop.f32.mrb[24].mxu0 }
 0x60d   : > { %v4204_v33 = vmul.f32 %v4548_v60, %v4190_v30  ;;  %v5245_v63 = vpop.f32.mrb[25].mxu0 }
 0x60e   : > { %v4193_v26 = vpop.f32.mrb[26].mxu0 }
 0x60f   : > { %v4211_v56 = vadd.f32 %v4549_v18, %v4204_v33  ;;  %v4205_v36 = vmul.f32 %v4548_v60, %v4193_v26  ;;  %v5246_v62 = vpop.f32.mrb[27].mxu0 }
 0x611   : > { %v4213_v50 = vmax.f32 %v4211_v56, 0.0  ;;  %v4212_v51 = vadd.f32 %v4549_v18, %v4205_v36 }
 0x613   : > { %v4214_v55 = vmax.f32 %v4212_v51, 0.0  ;;  %v4215_v19 = vrot.slane %v4213_v50, 1 }
 0x615   : > { %v4216_v22 = vrot.slane %v4214_v55, 1 }
 0x617   : > { %v4217_v49 = vsel %vm786_vm3, %v4215_v19, %v4216_v22  ;;  %v4218_v15 = vsel %vm786_vm3, %v4216_v22, %v4215_v19 }
 0x618   : > { %v4219_v17 = vmax.f32 %v4213_v50, %v4217_v49  ;;  %v4220_v1 = vmax.f32 %v4214_v55, %v4218_v15 }
 0x61a   : > { %v4221_v38 = vmax.f32 %v4219_v17, %v4220_v1 }
 0x61c   : > { %4222 = vst.msk [vmem:[#allocation2] sm:$0xff] %vm277_vm1, %v4221_v38  ;;  %4223 = vst.msk [vmem:[#allocation2 + $0x8] sm:$0xff] %vm277_vm1, %v4221_v38 }
 0x623   : > { %v4224_v25 = vld [vmem:[#allocation2] sm:$0x1] }
 0x624   : > { %4226 = vst.msk [vmem:[%s270_s18] sm:$0x1] %vm4225_vm7, %v4224_v25 }
 0x625   : > { %5623 = shalt.err (!%p5620_p3)
}
 0x626   : > { %s5624_s13 = scalar_lea.hbm %s7210_s22, 16  ;;  %s5628_s16 = scalar_lea.hbm %s7259_s7, 32 }
 0x627   : > { %p5625_p4 = scmp.ne.s32.totalorder %s7210_s22, %s5624_s13  ;;  %p5629_p9 = scmp.lt.u32.totalorder %s7210_s22, %s7259_s7 }
 0x628   : > { %p5630_p10 = scmp.lt.u32.totalorder %s5628_s16, %s5624_s13  ;;  %p5632_p12 = scmp.lt.u32.totalorder %s5624_s13, %s7210_s22 }
 0x629   : > { %p5626_p7 = pnand %p5625_p4, %p5755_p5 }
 0x62a   : > { %p5631_p11 = por %p5630_p10, %p5629_p9 }
 0x62b   : > { %p5627_p8 = pneg %p5626_p7 }
 0x62c   : > { %p5633_p13 = por %p5632_p12, %p5631_p11 }
 0x62e   : > { %p5634_p0 = pnand %p5633_p13, %p5627_p8 }
 0x630   : > { %5637 = shalt.err (!%p5634_p0)
}
 0x631   : > { %5443 = dma.vmem_to_hbm [thread:$0]  (%p5755_p5), %s7212_s19, 16, %s7210_s22, %s4228_s23  }
 0x632 PF: > { %p5449_p1 = scmp.ge.s32.totalorder %s5672_s27, 2  ;;  %s4252_s20 = sand.u32 1, %s5660_s24  }
 0x633   : > { %s4253_s21 = scalar_lea.sflag [#allocation7], %s4252_s20 }
 0x634   : > { %p5446_p2 = pnand %p5449_p1, %p5759_p6 }
 0x636   : > { %5655 = dma.done.wait (!%p5446_p2), %s4253_s21, 16  }
 0x637   : > { %5657 = vsyncadd (!%p5446_p2), %s4253_s21, 4294967280  ;;  %p17_p3 = scmp.ge.s32.totalorder %s5742_s30, 4   ;;  %s7262_s24 = smov %s5664_s25 }
 0x638   : > { %s7263_s25 = smov %s5668_s26  ;;  %s7264_s26 = smov %s5753_s10 }
 0x639   : > { %s7265_s27 = smov %s5742_s30  ;;  %19 = sbr.rel (!%p17_p3) target bundleno = 3 (0x3), region = 91 }
 0x640   :  { %4257 = vsyncpa [#allocation7], 1 }
 0x641   :  { %4259 = vsyncpa [#allocation7 + $0x1], 1 }

</bundles_post_ra>
